<compile_context>
chip_gen: v6e
topology: v6e:2x2x1
jax: 0.10.0
libtpu: 0.0.40
codegen_flags: <defaults>
</compile_context>

<pallas_src>
import functools

import jax
import jax.numpy as jnp
from jax import lax
from jax.experimental import pallas as pl
from jax.experimental.pallas import tpu as pltpu


_LANE = 128  # lane width (one full vreg row)


def _round_up(a, b):
    return -(-a // b) * b


# ---------------------------------------------------------------------------
# In-kernel helper math (traced inside the single fused kernel body)
# ---------------------------------------------------------------------------

def _l2norm(x, axis=-1):
    """F.normalize(x, dim=axis) semantics: x / max(||x||, 1e-12), via EUP rsqrt."""
    s = jnp.sum(x * x, axis=axis, keepdims=True)
    return x * lax.rsqrt(jnp.maximum(s, 1e-24))


def _bce_mean(p, t):
    """PyTorch BCELoss(mean): log terms clamped at -100."""
    log_p = jnp.maximum(jnp.log(p), -100.0)
    log_1mp = jnp.maximum(jnp.log(1.0 - p), -100.0)
    return jnp.sum(-(t * log_p + (1.0 - t) * log_1mp)) * (1.0 / float(p.size))


def _nce_from_normalized(qn, kn, negn, temperature):
    """CrossEntropy(label=0) over [q.k, q.neg_t] / T with pre-normalized inputs.

    qn, kn: (N, C); negn: (N, K, C). Implemented as logsumexp - l_pos (no concat).
    """
    inv_t = 1.0 / float(temperature)
    l_pos = jnp.sum(qn * kn, axis=1, keepdims=True) * inv_t            # (N, 1)
    # M=1-per-batch mat-vec: the MXU would run at <1% utilization here, so this stays on
    # the VPU broadcast+reduce path.
    # TODO(synk): at production N*K, reformulate as neg.reshape(N*K, C) @ qn.T -> (N*K, N)
    #             (real systolic matmul) and gather the block-diagonal column per row.
    l_neg = jnp.sum(qn[:, None, :] * negn, axis=2) * inv_t              # (N, K)

    m = jnp.maximum(l_pos, jnp.max(l_neg, axis=1, keepdims=True))       # (N, 1)
    sumexp = jnp.exp(l_pos - m) + jnp.sum(jnp.exp(l_neg - m), axis=1, keepdims=True)
    lse = m + jnp.log(sumexp)                                           # (N, 1)
    per_row = lse - l_pos                                               # (N, 1)
    return jnp.sum(per_row) * (1.0 / float(per_row.shape[0]))


# ---------------------------------------------------------------------------
# The single fused kernel (1-D grid streams the latent-MSE arrays)
# ---------------------------------------------------------------------------

def _total_loss_kernel(vs_ref, label_ref, pseudo_ref,
                       ha_ref, ea_ref, hb_ref, eb_ref,
                       se_ref, pos_ref, neg_ref,
                       feat_ref, dec_inter_ref, dec_intra_ref,
                       out_ref, acc_ref, *,
                       mse_count, nce_weight, pseudo_weight, latent_weight,
                       snico_t, infonce_t):
    step = pl.program_id(0)
    n_steps = pl.num_programs(0)

    # ---- init per-lane MSE accumulators on the first step ----
    @pl.when(step == 0)
    def _():
        acc_ref[...] = jnp.zeros_like(acc_ref)

    # ---- fused single pass over this feat tile: load feat once, accumulate BOTH
    #      squared-difference partial sums (per-lane, cross-sublane reduce only) ----
    feat = feat_ref[...].astype(jnp.float32)
    d_inter = feat - dec_inter_ref[...].astype(jnp.float32)
    d_intra = feat - dec_intra_ref[...].astype(jnp.float32)
    acc_ref[0:1, :] += jnp.sum(d_inter * d_inter, axis=0, keepdims=True)
    acc_ref[1:2, :] += jnp.sum(d_intra * d_intra, axis=0, keepdims=True)

    # ---- all small (per-video) loss terms + finalize, once, on the last step ----
    @pl.when(step == n_steps - 1)
    def _():
        # BCE losses (video_scores loaded once, shared by Action + Pseudo).
        vs = vs_ref[...].astype(jnp.float32)
        label = label_ref[...].astype(jnp.float32)
        pseudo = pseudo_ref[...].astype(jnp.float32)

        # ActionLoss target normalize (denominator clamped: identical for valid data,
        # avoids NaN propagation on an all-zero label row).
        label_n = label / jnp.maximum(jnp.sum(label, axis=1, keepdims=True), 1e-12)
        loss_cls = _bce_mean(vs, label_n)
        loss_pseudo = _bce_mean(vs, pseudo)

        # SniCoLoss (HA/EA/HB/EB resident; normalizations hoisted & shared).
        ha = ha_ref[...].astype(jnp.float32)
        ea = ea_ref[...].astype(jnp.float32)
        hb = hb_ref[...].astype(jnp.float32)
        eb = eb_ref[...].astype(jnp.float32)

        ha_q = _l2norm(jnp.mean(ha, axis=1))    # (N, C)
        ea_k = _l2norm(jnp.mean(ea, axis=1))
        hb_q = _l2norm(jnp.mean(hb, axis=1))
        eb_k = _l2norm(jnp.mean(eb, axis=1))
        ea_neg = _l2norm(ea)                    # (N, T, C), per-timestep normalize
        eb_neg = _l2norm(eb)

        loss_snico = (_nce_from_normalized(ha_q, ea_k, eb_neg, snico_t)
                      + _nce_from_normalized(hb_q, eb_k, ea_neg, snico_t))

        # InfoNCE.
        # TODO(synk): InfoNCELoss definition was not provided in the reference source;
        # implemented as standard normalized InfoNCE (T=0.07, positive logit first),
        # matching SniCoLoss.NCE semantics.
        se = _l2norm(se_ref[...].astype(jnp.float32))
        pos = _l2norm(pos_ref[...].astype(jnp.float32))
        neg = _l2norm(neg_ref[...].astype(jnp.float32))
        # TODO(synk): for small C (<128) repack negatives lane-dense (K on lanes) to avoid
        #             75%-masked vregs in the broadcast+reduce above.
        loss_nce = _nce_from_normalized(se, pos, neg, infonce_t)

        # LatentLoss means from the streamed accumulators (padding rows are zero-diff).
        inv_n = 1.0 / float(mse_count)
        loss_latent_inter = jnp.sum(acc_ref[0:1, :]) * inv_n
        loss_latent_intra = jnp.sum(acc_ref[1:2, :]) * inv_n
        loss_latent = loss_latent_inter + loss_latent_intra

        # Weighted total, computed in-kernel.
        loss_total = (loss_cls
                      + 0.01 * loss_snico
                      + nce_weight * loss_nce
                      + pseudo_weight * loss_pseudo
                      + latent_weight * loss_latent)

        # Lane-dense packed output: lanes 0..7 carry the 8 scalars; single unmasked
        # full-tile store. (Kept as the iota+select pack: it is a proven-lowering,
        # tail-only micro-cost; an SMEM (8,) scalar output is the alternative.)
        vals = (loss_total, loss_cls, loss_snico, loss_nce,
                loss_pseudo, loss_latent_inter, loss_latent_intra, loss_latent)
        lane = lax.broadcasted_iota(jnp.int32, (1, _LANE), 1)
        packed = jnp.zeros((1, _LANE), jnp.float32)
        for i, v in enumerate(vals):
            packed = jnp.where(lane == i, v, packed)
        out_ref[...] = packed


# ---------------------------------------------------------------------------
# Wrapper (single pallas_call, 1-D grid over lane-dense MSE rows)
# ---------------------------------------------------------------------------

def _pad_lane_dense(x, rows_pad):
    """Flatten to a lane-dense (rows_pad, 128) slab, zero-padding the tail."""
    flat = x.reshape(-1)
    total = rows_pad * _LANE
    n = flat.shape[0]
    if total > n:
        flat = jnp.pad(flat, (0, total - n))
    return flat.reshape(rows_pad, _LANE)


class Config:
    # Deterministic synthetic config scalars (module has no trainable parameters).
    NCE_WEIGHT = 0.1
    PSEUDO_WEIGHT = 0.5
    LATENT_LOSS_WEIGHT = 1.0


def total_loss(cfg, video_scores, label, contrast_pairs, sampled_embeddings,
               positives, negatives, pseudo_label, enc_decoder_embeddings,
               *, tile_rows=512):
    input_feature, decoded_inter, decoded_intra = enc_decoder_embeddings

    # ---- tiling of the streamed (latent-MSE) arrays ----
    n_feat = int(input_feature.size)
    rows = _round_up(n_feat, _LANE) // _LANE
    # Tile rows: multiple of 8 (sublane granularity), clamped to the (8-rounded) row count.
    tr = min(int(tile_rows), _round_up(rows, 8))
    tr = max(8, (tr // 8) * 8)
    rows_pad = _round_up(rows, tr)
    grid = (rows_pad // tr,)

    feat_p = _pad_lane_dense(input_feature, rows_pad)
    dinter_p = _pad_lane_dense(decoded_inter, rows_pad)
    dintra_p = _pad_lane_dense(decoded_intra, rows_pad)

    kern = functools.partial(
        _total_loss_kernel,
        mse_count=n_feat,
        nce_weight=float(cfg.NCE_WEIGHT),
        pseudo_weight=float(cfg.PSEUDO_WEIGHT),
        latent_weight=float(cfg.LATENT_LOSS_WEIGHT),
        snico_t=0.07,
        infonce_t=0.07,
    )

    small_args = (
        video_scores, label, pseudo_label,
        contrast_pairs['HA'], contrast_pairs['EA'],
        contrast_pairs['HB'], contrast_pairs['EB'],
        sampled_embeddings, positives, negatives,
    )

    def _resident_spec(x):
        # Full-array block with a constant index map: DMA'd once, resident across the grid.
        nd = x.ndim
        return pl.BlockSpec(x.shape, lambda i, _nd=nd: (0,) * _nd)

    stream_spec = pl.BlockSpec((tr, _LANE), lambda i: (i, 0))

    in_specs = [_resident_spec(a) for a in small_args] + [stream_spec] * 3
    out_specs = pl.BlockSpec((1, _LANE), lambda i: (0, 0))

    out = pl.pallas_call(
        kern,
        out_shape=jax.ShapeDtypeStruct((1, _LANE), jnp.float32),
        grid_spec=pltpu.PrefetchScalarGridSpec(
            num_scalar_prefetch=0,
            grid=grid,
            in_specs=in_specs,
            out_specs=out_specs,
            scratch_shapes=[pltpu.VMEM((2, _LANE), jnp.float32)],
        ),
        compiler_params=pltpu.CompilerParams(
            # Single axis carries the MSE accumulator -> "arbitrary".
            # TODO(synk): add a leading "parallel" axis with per-core partial sums for
            #             v7x megacore once the accumulator is split per core.
            dimension_semantics=("arbitrary",),
            # Sized for v7x (64 MiB physical VMEM, 32 MiB scoped default); the streamed
            # resident set here is 3 arrays x 2 buffers x (tile_rows x 128 x 4B).
            vmem_limit_bytes=48 * 1024 * 1024,
        ),
    )(*small_args, feat_p, dinter_p, dintra_p)

    row = out[0]
    loss_total = row[0]
    loss_dict = {
        'Loss/Total': row[0],
        'Loss/Action': row[1],
        'Loss/SniCo': row[2],
        'Loss/Intra': row[3],
        'Loss/Pseudo': row[4],
        'Loss/LatentInter': row[5],
        'Loss/LatentIntra': row[6],
        'Loss/LatentCombined': row[7],
    }
    return loss_total, loss_dict


# ---------------------------------------------------------------------------
# Pure-JAX reference (for a sanity check only)
# ---------------------------------------------------------------------------

def _ref_total_loss(cfg, video_scores, label, contrast_pairs, sampled_embeddings,
                    positives, negatives, pseudo_label, enc_decoder_embeddings):
    def bce(p, t):
        log_p = jnp.maximum(jnp.log(p), -100.0)
        log_1mp = jnp.maximum(jnp.log(1.0 - p), -100.0)
        return jnp.mean(-(t * log_p + (1.0 - t) * log_1mp))

    def l2n(x, axis=-1):
        n = jnp.sqrt(jnp.sum(x * x, axis=axis, keepdims=True))
        return x / jnp.maximum(n, 1e-12)

    def nce(q, k, neg, T=0.07):
        qn, kn, negn = l2n(q), l2n(k), l2n(neg, axis=-1)
        l_pos = jnp.sum(qn * kn, axis=1, keepdims=True)
        l_neg = jnp.einsum('nc,nkc->nk', qn, negn)
        logits = jnp.concatenate([l_pos, l_neg], axis=1) / T
        lse = jax.nn.logsumexp(logits, axis=1)
        return jnp.mean(lse - logits[:, 0])

    input_feature, decoded_inter, decoded_intra = enc_decoder_embeddings
    loss_cls = bce(video_scores, label / jnp.sum(label, axis=1, keepdims=True))
    loss_snico = (nce(jnp.mean(contrast_pairs['HA'], 1), jnp.mean(contrast_pairs['EA'], 1),
                      contrast_pairs['EB'])
                  + nce(jnp.mean(contrast_pairs['HB'], 1), jnp.mean(contrast_pairs['EB'], 1),
                        contrast_pairs['EA']))
    loss_nce = nce(sampled_embeddings, positives, negatives)
    loss_pseudo = bce(video_scores, pseudo_label)
    loss_li = jnp.mean((input_feature - decoded_inter) ** 2)
    loss_lt = jnp.mean((input_feature - decoded_intra) ** 2)
    total = (loss_cls + 0.01 * loss_snico + cfg.NCE_WEIGHT * loss_nce
             + cfg.PSEUDO_WEIGHT * loss_pseudo
             + cfg.LATENT_LOSS_WEIGHT * (loss_li + loss_lt))
    return total


# ---------------------------------------------------------------------------
# Demo
# ---------------------------------------------------------------------------

if __name__ == "__main__":
    key = jax.random.PRNGKey(0)
    keys = jax.random.split(key, 12)

    B, NUM_CLASSES = 2, 8        # video-level scores / labels
    N_CP, T_CP, C = 2, 8, 32     # contrast pairs
    N_S, K_NEG = 4, 8            # sampled embeddings / negatives for InfoNCE
    B_F, T_F, C_F = 2, 64, 64    # encoder/decoder feature sequences (8192 elems -> 64 rows)

    video_scores = jax.nn.sigmoid(jax.random.normal(keys[0], (B, NUM_CLASSES), jnp.float32))
    label = (jax.random.uniform(keys[1], (B, NUM_CLASSES)) > 0.5).astype(jnp.float32)
    label = label.at[:, 0].set(1.0)  # guarantee non-zero row sums
    pseudo_label = jax.random.uniform(keys[2], (B, NUM_CLASSES), jnp.float32)

    contrast_pairs = {
        'HA': jax.random.normal(keys[3], (N_CP, T_CP, C), jnp.float32),
        'EA': jax.random.normal(keys[4], (N_CP, T_CP, C), jnp.float32),
        'HB': jax.random.normal(keys[5], (N_CP, T_CP, C), jnp.float32),
        'EB': jax.random.normal(keys[6], (N_CP, T_CP, C), jnp.float32),
    }

    sampled_embeddings = jax.random.normal(keys[7], (N_S, C), jnp.float32)
    positives = jax.random.normal(keys[8], (N_S, C), jnp.float32)
    negatives = jax.random.normal(keys[9], (N_S, K_NEG, C), jnp.float32)

    input_feature = jax.random.normal(keys[10], (B_F, T_F, C_F), jnp.float32)
    decoded_inter = input_feature + 0.1 * jax.random.normal(keys[11], (B_F, T_F, C_F), jnp.float32)
    decoded_intra = input_feature + 0.2 * jax.random.normal(keys[0], (B_F, T_F, C_F), jnp.float32)
    enc_decoder_embeddings = (input_feature, decoded_inter, decoded_intra)

    cfg = Config()
    # tile_rows=16 -> 4 grid steps at this demo size (default 512 for production shapes).
    loss_total, loss_dict = total_loss(cfg, video_scores, label, contrast_pairs,
                                       sampled_embeddings, positives, negatives,
                                       pseudo_label, enc_decoder_embeddings,
                                       tile_rows=16)
    jax.block_until_ready(loss_total)
    jax.block_until_ready(loss_dict)
    assert bool(jnp.isfinite(loss_total))

    ref_total = _ref_total_loss(cfg, video_scores, label, contrast_pairs,
                                sampled_embeddings, positives, negatives,
                                pseudo_label, enc_decoder_embeddings)
    assert bool(jnp.allclose(loss_total, ref_total, rtol=2e-3, atol=1e-5)), \
        (float(loss_total), float(ref_total))

    print("KERNEL_OK")
</pallas_src>

<mosaic_0001>
module attributes {stable_mosaic.version = 11 : i64} {
  func.func @_total_loss_kernel(%arg0: i32, %arg1: memref<2x8xf32, #tpu.memory_space<vmem>>, %arg2: memref<2x8xf32, #tpu.memory_space<vmem>>, %arg3: memref<2x8xf32, #tpu.memory_space<vmem>>, %arg4: memref<2x8x32xf32, #tpu.memory_space<vmem>>, %arg5: memref<2x8x32xf32, #tpu.memory_space<vmem>>, %arg6: memref<2x8x32xf32, #tpu.memory_space<vmem>>, %arg7: memref<2x8x32xf32, #tpu.memory_space<vmem>>, %arg8: memref<4x32xf32, #tpu.memory_space<vmem>>, %arg9: memref<4x32xf32, #tpu.memory_space<vmem>>, %arg10: memref<4x8x32xf32, #tpu.memory_space<vmem>>, %arg11: memref<16x128xf32, #tpu.memory_space<vmem>>, %arg12: memref<16x128xf32, #tpu.memory_space<vmem>>, %arg13: memref<16x128xf32, #tpu.memory_space<vmem>>, %arg14: memref<1x128xf32, #tpu.memory_space<vmem>>, %arg15: memref<2x128xf32, #tpu.memory_space<vmem>>) attributes {dimension_semantics = [#tpu.dimension_semantics<arbitrary>], iteration_bounds = array<i64: 4>, scalar_prefetch = 0 : i64, scratch_operands = 1 : i64, tpu.core_type = #tpu.core_type<tc>, window_params = [{pipeline_mode = #tpu.pipeline_mode<synchronous>, transform_indices = @transform_0, window_bounds = array<i64: 2, 8>}, {pipeline_mode = #tpu.pipeline_mode<synchronous>, transform_indices = @transform_1, window_bounds = array<i64: 2, 8>}, {pipeline_mode = #tpu.pipeline_mode<synchronous>, transform_indices = @transform_2, window_bounds = array<i64: 2, 8>}, {pipeline_mode = #tpu.pipeline_mode<synchronous>, transform_indices = @transform_3, window_bounds = array<i64: 2, 8, 32>}, {pipeline_mode = #tpu.pipeline_mode<synchronous>, transform_indices = @transform_4, window_bounds = array<i64: 2, 8, 32>}, {pipeline_mode = #tpu.pipeline_mode<synchronous>, transform_indices = @transform_5, window_bounds = array<i64: 2, 8, 32>}, {pipeline_mode = #tpu.pipeline_mode<synchronous>, transform_indices = @transform_6, window_bounds = array<i64: 2, 8, 32>}, {pipeline_mode = #tpu.pipeline_mode<synchronous>, transform_indices = @transform_7, window_bounds = array<i64: 4, 32>}, {pipeline_mode = #tpu.pipeline_mode<synchronous>, transform_indices = @transform_8, window_bounds = array<i64: 4, 32>}, {pipeline_mode = #tpu.pipeline_mode<synchronous>, transform_indices = @transform_9, window_bounds = array<i64: 4, 8, 32>}, {transform_indices = @transform_10, window_bounds = array<i64: 16, 128>}, {transform_indices = @transform_11, window_bounds = array<i64: 16, 128>}, {transform_indices = @transform_12, window_bounds = array<i64: 16, 128>}, {pipeline_mode = #tpu.pipeline_mode<synchronous>, transform_indices = @transform_13, window_bounds = array<i64: 1, 128>}]} {
    %c0_i32 = arith.constant 0 : i32
    %0 = arith.cmpi eq, %arg0, %c0_i32 : i32
    %1 = arith.extui %0 : i1 to i32
    %c0_i32_0 = arith.constant 0 : i32
    %2 = arith.cmpi ne, %1, %c0_i32_0 : i32
    scf.if %2 {
      %cst_15 = arith.constant 0.000000e+00 : f32
      %23 = vector.broadcast %cst_15 : f32 to vector<2x128xf32>
      %c0_16 = arith.constant 0 : index
      %c0_17 = arith.constant 0 : index
      %24 = vector.load %arg15[%c0_16, %c0_17] : memref<2x128xf32, #tpu.memory_space<vmem>>, vector<2x128xf32>
      tpu.vector_store %arg15[%c0_16, %c0_17], %23 {strides = array<i32>} : memref<2x128xf32, #tpu.memory_space<vmem>>, vector<2x128xf32>,
    } else {
    }
    %c0 = arith.constant 0 : index
    %c0_1 = arith.constant 0 : index
    %3 = vector.load %arg11[%c0, %c0_1] : memref<16x128xf32, #tpu.memory_space<vmem>>, vector<16x128xf32>
    %c0_2 = arith.constant 0 : index
    %c0_3 = arith.constant 0 : index
    %4 = vector.load %arg12[%c0_2, %c0_3] : memref<16x128xf32, #tpu.memory_space<vmem>>, vector<16x128xf32>
    %5 = arith.subf %3, %4 : vector<16x128xf32>
    %c0_4 = arith.constant 0 : index
    %c0_5 = arith.constant 0 : index
    %6 = vector.load %arg13[%c0_4, %c0_5] : memref<16x128xf32, #tpu.memory_space<vmem>>, vector<16x128xf32>
    %7 = arith.subf %3, %6 : vector<16x128xf32>
    %c0_6 = arith.constant 0 : index
    %c0_7 = arith.constant 0 : index
    %8 = vector.load %arg15[%c0_6, %c0_7] : memref<2x128xf32, #tpu.memory_space<vmem>>, vector<1x128xf32>
    %9 = arith.mulf %5, %5 : vector<16x128xf32>
    %cst = arith.constant dense<0.000000e+00> : vector<128xf32>
    %10 = vector.multi_reduction <add>, %9, %cst [0] : vector<16x128xf32> to vector<128xf32>
    %11 = vector.shape_cast %10 : vector<128xf32> to vector<1x128xf32>
    %12 = arith.addf %8, %11 : vector<1x128xf32>
    %c0_8 = arith.constant 0 : index
    %c0_9 = arith.constant 0 : index
    %13 = vector.load %arg15[%c0_8, %c0_9] : memref<2x128xf32, #tpu.memory_space<vmem>>, vector<1x128xf32>
    tpu.vector_store %arg15[%c0_8, %c0_9], %12 {strides = array<i32>} : memref<2x128xf32, #tpu.memory_space<vmem>>, vector<1x128xf32>,
    %c1 = arith.constant 1 : index
    %c0_10 = arith.constant 0 : index
    %14 = vector.load %arg15[%c1, %c0_10] : memref<2x128xf32, #tpu.memory_space<vmem>>, vector<1x128xf32>
    %15 = arith.mulf %7, %7 : vector<16x128xf32>
    %cst_11 = arith.constant dense<0.000000e+00> : vector<128xf32>
    %16 = vector.multi_reduction <add>, %15, %cst_11 [0] : vector<16x128xf32> to vector<128xf32>
    %17 = vector.shape_cast %16 : vector<128xf32> to vector<1x128xf32>
    %18 = arith.addf %14, %17 : vector<1x128xf32>
    %c1_12 = arith.constant 1 : index
    %c0_13 = arith.constant 0 : index
    %19 = vector.load %arg15[%c1_12, %c0_13] : memref<2x128xf32, #tpu.memory_space<vmem>>, vector<1x128xf32>
    tpu.vector_store %arg15[%c1_12, %c0_13], %18 {strides = array<i32>} : memref<2x128xf32, #tpu.memory_space<vmem>>, vector<1x128xf32>,
    %c3_i32 = arith.constant 3 : i32
    %20 = arith.cmpi eq, %arg0, %c3_i32 : i32
    %21 = arith.extui %20 : i1 to i32
    %c0_i32_14 = arith.constant 0 : i32
    %22 = arith.cmpi ne, %21, %c0_i32_14 : i32
    scf.if %22 {
      %c0_15 = arith.constant 0 : index
      %c0_16 = arith.constant 0 : index
      %23 = vector.load %arg1[%c0_15, %c0_16] : memref<2x8xf32, #tpu.memory_space<vmem>>, vector<2x8xf32>
      %c0_17 = arith.constant 0 : index
      %c0_18 = arith.constant 0 : index
      %24 = vector.load %arg2[%c0_17, %c0_18] : memref<2x8xf32, #tpu.memory_space<vmem>>, vector<2x8xf32>
      %c0_19 = arith.constant 0 : index
      %c0_20 = arith.constant 0 : index
      %25 = vector.load %arg3[%c0_19, %c0_20] : memref<2x8xf32, #tpu.memory_space<vmem>>, vector<2x8xf32>
      %cst_21 = arith.constant dense<0.000000e+00> : vector<2xf32>
      %26 = vector.multi_reduction <add>, %24, %cst_21 [1] : vector<2x8xf32> to vector<2xf32>
      %27 = vector.shape_cast %26 : vector<2xf32> to vector<2x1xf32>
      %cst_22 = arith.constant 9.99999996E-13 : f32
      %28 = vector.broadcast %cst_22 : f32 to vector<2x1xf32>
      %29 = arith.maximumf %27, %28 : vector<2x1xf32>
      %30 = vector.broadcast %29 : vector<2x1xf32> to vector<2x8xf32>
      %31 = arith.divf %24, %30 : vector<2x8xf32>
      %32 = math.log %23 : vector<2x8xf32>
      %cst_23 = arith.constant -1.000000e+02 : f32
      %33 = vector.broadcast %cst_23 : f32 to vector<2x8xf32>
      %34 = arith.maximumf %32, %33 : vector<2x8xf32>
      %cst_24 = arith.constant 1.000000e+00 : f32
      %35 = vector.broadcast %cst_24 : f32 to vector<2x8xf32>
      %36 = arith.subf %35, %23 : vector<2x8xf32>
      %37 = math.log %36 : vector<2x8xf32>
      %cst_25 = arith.constant -1.000000e+02 : f32
      %38 = vector.broadcast %cst_25 : f32 to vector<2x8xf32>
      %39 = arith.maximumf %37, %38 : vector<2x8xf32>
      %40 = arith.mulf %31, %34 : vector<2x8xf32>
      %cst_26 = arith.constant 1.000000e+00 : f32
      %41 = vector.broadcast %cst_26 : f32 to vector<2x8xf32>
      %42 = arith.subf %41, %31 : vector<2x8xf32>
      %43 = arith.mulf %42, %39 : vector<2x8xf32>
      %44 = arith.addf %40, %43 : vector<2x8xf32>
      %cst_27 = arith.constant 0.000000e+00 : f32
      %45 = vector.broadcast %cst_27 : f32 to vector<2x8xf32>
      %46 = arith.subf %45, %44 : vector<2x8xf32>
      %47 = vector.shape_cast %46 : vector<2x8xf32> to vector<1x2x8xf32>
      %cst_28 = arith.constant dense<0.000000e+00> : vector<1xf32>
      %48 = vector.multi_reduction <add>, %47, %cst_28 [1, 2] : vector<1x2x8xf32> to vector<1xf32>
      %49 = vector.shape_cast %48 : vector<1xf32> to vector<1x1x1xf32>
      %50 = vector.extract %49[0, 0, 0] : f32 from vector<1x1x1xf32>
      %cst_29 = arith.constant 6.250000e-02 : f32
      %51 = arith.mulf %50, %cst_29 : f32
      %52 = math.log %23 : vector<2x8xf32>
      %cst_30 = arith.constant -1.000000e+02 : f32
      %53 = vector.broadcast %cst_30 : f32 to vector<2x8xf32>
      %54 = arith.maximumf %52, %53 : vector<2x8xf32>
      %cst_31 = arith.constant 1.000000e+00 : f32
      %55 = vector.broadcast %cst_31 : f32 to vector<2x8xf32>
      %56 = arith.subf %55, %23 : vector<2x8xf32>
      %57 = math.log %56 : vector<2x8xf32>
      %cst_32 = arith.constant -1.000000e+02 : f32
      %58 = vector.broadcast %cst_32 : f32 to vector<2x8xf32>
      %59 = arith.maximumf %57, %58 : vector<2x8xf32>
      %60 = arith.mulf %25, %54 : vector<2x8xf32>
      %cst_33 = arith.constant 1.000000e+00 : f32
      %61 = vector.broadcast %cst_33 : f32 to vector<2x8xf32>
      %62 = arith.subf %61, %25 : vector<2x8xf32>
      %63 = arith.mulf %62, %59 : vector<2x8xf32>
      %64 = arith.addf %60, %63 : vector<2x8xf32>
      %cst_34 = arith.constant 0.000000e+00 : f32
      %65 = vector.broadcast %cst_34 : f32 to vector<2x8xf32>
      %66 = arith.subf %65, %64 : vector<2x8xf32>
      %67 = vector.shape_cast %66 : vector<2x8xf32> to vector<1x2x8xf32>
      %cst_35 = arith.constant dense<0.000000e+00> : vector<1xf32>
      %68 = vector.multi_reduction <add>, %67, %cst_35 [1, 2] : vector<1x2x8xf32> to vector<1xf32>
      %69 = vector.shape_cast %68 : vector<1xf32> to vector<1x1x1xf32>
      %70 = vector.extract %69[0, 0, 0] : f32 from vector<1x1x1xf32>
      %cst_36 = arith.constant 6.250000e-02 : f32
      %71 = arith.mulf %70, %cst_36 : f32
      %c0_37 = arith.constant 0 : index
      %c0_38 = arith.constant 0 : index
      %c0_39 = arith.constant 0 : index
      %72 = vector.load %arg4[%c0_37, %c0_38, %c0_39] : memref<2x8x32xf32, #tpu.memory_space<vmem>>, vector<2x8x32xf32>
      %c0_40 = arith.constant 0 : index
      %c0_41 = arith.constant 0 : index
      %c0_42 = arith.constant 0 : index
      %73 = vector.load %arg5[%c0_40, %c0_41, %c0_42] : memref<2x8x32xf32, #tpu.memory_space<vmem>>, vector<2x8x32xf32>
      %c0_43 = arith.constant 0 : index
      %c0_44 = arith.constant 0 : index
      %c0_45 = arith.constant 0 : index
      %74 = vector.load %arg6[%c0_43, %c0_44, %c0_45] : memref<2x8x32xf32, #tpu.memory_space<vmem>>, vector<2x8x32xf32>
      %c0_46 = arith.constant 0 : index
      %c0_47 = arith.constant 0 : index
      %c0_48 = arith.constant 0 : index
      %75 = vector.load %arg7[%c0_46, %c0_47, %c0_48] : memref<2x8x32xf32, #tpu.memory_space<vmem>>, vector<2x8x32xf32>
      %cst_49 = arith.constant dense<0.000000e+00> : vector<2x32xf32>
      %76 = vector.multi_reduction <add>, %72, %cst_49 [1] : vector<2x8x32xf32> to vector<2x32xf32>
      %cst_50 = arith.constant 8.000000e+00 : f32
      %77 = vector.broadcast %cst_50 : f32 to vector<2x32xf32>
      %78 = arith.divf %76, %77 : vector<2x32xf32>
      %79 = arith.mulf %78, %78 : vector<2x32xf32>
      %cst_51 = arith.constant dense<0.000000e+00> : vector<2xf32>
      %80 = vector.multi_reduction <add>, %79, %cst_51 [1] : vector<2x32xf32> to vector<2xf32>
      %81 = vector.shape_cast %80 : vector<2xf32> to vector<2x1xf32>
      %cst_52 = arith.constant 1.000000e-24 : f32
      %82 = vector.broadcast %cst_52 : f32 to vector<2x1xf32>
      %83 = arith.maximumf %81, %82 : vector<2x1xf32>
      %84 = math.rsqrt %83 : vector<2x1xf32>
      %85 = vector.broadcast %84 : vector<2x1xf32> to vector<2x32xf32>
      %86 = arith.mulf %78, %85 : vector<2x32xf32>
      %cst_53 = arith.constant dense<0.000000e+00> : vector<2x32xf32>
      %87 = vector.multi_reduction <add>, %73, %cst_53 [1] : vector<2x8x32xf32> to vector<2x32xf32>
      %cst_54 = arith.constant 8.000000e+00 : f32
      %88 = vector.broadcast %cst_54 : f32 to vector<2x32xf32>
      %89 = arith.divf %87, %88 : vector<2x32xf32>
      %90 = arith.mulf %89, %89 : vector<2x32xf32>
      %cst_55 = arith.constant dense<0.000000e+00> : vector<2xf32>
      %91 = vector.multi_reduction <add>, %90, %cst_55 [1] : vector<2x32xf32> to vector<2xf32>
      %92 = vector.shape_cast %91 : vector<2xf32> to vector<2x1xf32>
      %cst_56 = arith.constant 1.000000e-24 : f32
      %93 = vector.broadcast %cst_56 : f32 to vector<2x1xf32>
      %94 = arith.maximumf %92, %93 : vector<2x1xf32>
      %95 = math.rsqrt %94 : vector<2x1xf32>
      %96 = vector.broadcast %95 : vector<2x1xf32> to vector<2x32xf32>
      %97 = arith.mulf %89, %96 : vector<2x32xf32>
      %cst_57 = arith.constant dense<0.000000e+00> : vector<2x32xf32>
      %98 = vector.multi_reduction <add>, %74, %cst_57 [1] : vector<2x8x32xf32> to vector<2x32xf32>
      %cst_58 = arith.constant 8.000000e+00 : f32
      %99 = vector.broadcast %cst_58 : f32 to vector<2x32xf32>
      %100 = arith.divf %98, %99 : vector<2x32xf32>
      %101 = arith.mulf %100, %100 : vector<2x32xf32>
      %cst_59 = arith.constant dense<0.000000e+00> : vector<2xf32>
      %102 = vector.multi_reduction <add>, %101, %cst_59 [1] : vector<2x32xf32> to vector<2xf32>
      %103 = vector.shape_cast %102 : vector<2xf32> to vector<2x1xf32>
      %cst_60 = arith.constant 1.000000e-24 : f32
      %104 = vector.broadcast %cst_60 : f32 to vector<2x1xf32>
      %105 = arith.maximumf %103, %104 : vector<2x1xf32>
      %106 = math.rsqrt %105 : vector<2x1xf32>
      %107 = vector.broadcast %106 : vector<2x1xf32> to vector<2x32xf32>
      %108 = arith.mulf %100, %107 : vector<2x32xf32>
      %cst_61 = arith.constant dense<0.000000e+00> : vector<2x32xf32>
      %109 = vector.multi_reduction <add>, %75, %cst_61 [1] : vector<2x8x32xf32> to vector<2x32xf32>
      %cst_62 = arith.constant 8.000000e+00 : f32
      %110 = vector.broadcast %cst_62 : f32 to vector<2x32xf32>
      %111 = arith.divf %109, %110 : vector<2x32xf32>
      %112 = arith.mulf %111, %111 : vector<2x32xf32>
      %cst_63 = arith.constant dense<0.000000e+00> : vector<2xf32>
      %113 = vector.multi_reduction <add>, %112, %cst_63 [1] : vector<2x32xf32> to vector<2xf32>
      %114 = vector.shape_cast %113 : vector<2xf32> to vector<2x1xf32>
      %cst_64 = arith.constant 1.000000e-24 : f32
      %115 = vector.broadcast %cst_64 : f32 to vector<2x1xf32>
      %116 = arith.maximumf %114, %115 : vector<2x1xf32>
      %117 = math.rsqrt %116 : vector<2x1xf32>
      %118 = vector.broadcast %117 : vector<2x1xf32> to vector<2x32xf32>
      %119 = arith.mulf %111, %118 : vector<2x32xf32>
      %120 = arith.mulf %73, %73 : vector<2x8x32xf32>
      %cst_65 = arith.constant dense<0.000000e+00> : vector<2x8xf32>
      %121 = vector.multi_reduction <add>, %120, %cst_65 [2] : vector<2x8x32xf32> to vector<2x8xf32>
      %122 = vector.shape_cast %121 : vector<2x8xf32> to vector<2x8x1xf32>
      %cst_66 = arith.constant 1.000000e-24 : f32
      %123 = vector.broadcast %cst_66 : f32 to vector<2x8x1xf32>
      %124 = arith.maximumf %122, %123 : vector<2x8x1xf32>
      %125 = math.rsqrt %124 : vector<2x8x1xf32>
      %126 = vector.broadcast %125 : vector<2x8x1xf32> to vector<2x8x32xf32>
      %127 = arith.mulf %73, %126 : vector<2x8x32xf32>
      %128 = arith.mulf %75, %75 : vector<2x8x32xf32>
      %cst_67 = arith.constant dense<0.000000e+00> : vector<2x8xf32>
      %129 = vector.multi_reduction <add>, %128, %cst_67 [2] : vector<2x8x32xf32> to vector<2x8xf32>
      %130 = vector.shape_cast %129 : vector<2x8xf32> to vector<2x8x1xf32>
      %cst_68 = arith.constant 1.000000e-24 : f32
      %131 = vector.broadcast %cst_68 : f32 to vector<2x8x1xf32>
      %132 = arith.maximumf %130, %131 : vector<2x8x1xf32>
      %133 = math.rsqrt %132 : vector<2x8x1xf32>
      %134 = vector.broadcast %133 : vector<2x8x1xf32> to vector<2x8x32xf32>
      %135 = arith.mulf %75, %134 : vector<2x8x32xf32>
      %136 = arith.mulf %86, %97 : vector<2x32xf32>
      %cst_69 = arith.constant dense<0.000000e+00> : vector<2xf32>
      %137 = vector.multi_reduction <add>, %136, %cst_69 [1] : vector<2x32xf32> to vector<2xf32>
      %138 = vector.shape_cast %137 : vector<2xf32> to vector<2x1xf32>
      %cst_70 = arith.constant 14.2857141 : f32
      %139 = vector.broadcast %cst_70 : f32 to vector<2x1xf32>
      %140 = arith.mulf %138, %139 : vector<2x1xf32>
      %141 = vector.shape_cast %86 : vector<2x32xf32> to vector<2x1x32xf32>
      %142 = vector.broadcast %141 : vector<2x1x32xf32> to vector<2x8x32xf32>
      %143 = arith.mulf %142, %135 : vector<2x8x32xf32>
      %cst_71 = arith.constant dense<0.000000e+00> : vector<2x8xf32>
      %144 = vector.multi_reduction <add>, %143, %cst_71 [2] : vector<2x8x32xf32> to vector<2x8xf32>
      %cst_72 = arith.constant 14.2857141 : f32
      %145 = vector.broadcast %cst_72 : f32 to vector<2x8xf32>
      %146 = arith.mulf %144, %145 : vector<2x8xf32>
      %cst_73 = arith.constant dense<0xFF800000> : vector<2xf32>
      %147 = vector.multi_reduction <maximumf>, %146, %cst_73 [1] : vector<2x8xf32> to vector<2xf32>
      %148 = vector.shape_cast %147 : vector<2xf32> to vector<2x1xf32>
      %149 = arith.maximumf %140, %148 : vector<2x1xf32>
      %150 = arith.subf %140, %149 : vector<2x1xf32>
      %151 = math.exp %150 : vector<2x1xf32>
      %152 = vector.broadcast %149 : vector<2x1xf32> to vector<2x8xf32>
      %153 = arith.subf %146, %152 : vector<2x8xf32>
      %154 = math.exp %153 : vector<2x8xf32>
      %cst_74 = arith.constant dense<0.000000e+00> : vector<2xf32>
      %155 = vector.multi_reduction <add>, %154, %cst_74 [1] : vector<2x8xf32> to vector<2xf32>
      %156 = vector.shape_cast %155 : vector<2xf32> to vector<2x1xf32>
      %157 = arith.addf %151, %156 : vector<2x1xf32>
      %158 = math.log %157 : vector<2x1xf32>
      %159 = arith.addf %149, %158 : vector<2x1xf32>
      %160 = arith.subf %159, %140 : vector<2x1xf32>
      %161 = vector.shape_cast %160 : vector<2x1xf32> to vector<1x2x1xf32>
      %cst_75 = arith.constant dense<0.000000e+00> : vector<1xf32>
      %162 = vector.multi_reduction <add>, %161, %cst_75 [1, 2] : vector<1x2x1xf32> to vector<1xf32>
      %163 = vector.shape_cast %162 : vector<1xf32> to vector<1x1x1xf32>
      %164 = vector.extract %163[0, 0, 0] : f32 from vector<1x1x1xf32>
      %cst_76 = arith.constant 5.000000e-01 : f32
      %165 = arith.mulf %164, %cst_76 : f32
      %166 = arith.mulf %108, %119 : vector<2x32xf32>
      %cst_77 = arith.constant dense<0.000000e+00> : vector<2xf32>
      %167 = vector.multi_reduction <add>, %166, %cst_77 [1] : vector<2x32xf32> to vector<2xf32>
      %168 = vector.shape_cast %167 : vector<2xf32> to vector<2x1xf32>
      %cst_78 = arith.constant 14.2857141 : f32
      %169 = vector.broadcast %cst_78 : f32 to vector<2x1xf32>
      %170 = arith.mulf %168, %169 : vector<2x1xf32>
      %171 = vector.shape_cast %108 : vector<2x32xf32> to vector<2x1x32xf32>
      %172 = vector.broadcast %171 : vector<2x1x32xf32> to vector<2x8x32xf32>
      %173 = arith.mulf %172, %127 : vector<2x8x32xf32>
      %cst_79 = arith.constant dense<0.000000e+00> : vector<2x8xf32>
      %174 = vector.multi_reduction <add>, %173, %cst_79 [2] : vector<2x8x32xf32> to vector<2x8xf32>
      %cst_80 = arith.constant 14.2857141 : f32
      %175 = vector.broadcast %cst_80 : f32 to vector<2x8xf32>
      %176 = arith.mulf %174, %175 : vector<2x8xf32>
      %cst_81 = arith.constant dense<0xFF800000> : vector<2xf32>
      %177 = vector.multi_reduction <maximumf>, %176, %cst_81 [1] : vector<2x8xf32> to vector<2xf32>
      %178 = vector.shape_cast %177 : vector<2xf32> to vector<2x1xf32>
      %179 = arith.maximumf %170, %178 : vector<2x1xf32>
      %180 = arith.subf %170, %179 : vector<2x1xf32>
      %181 = math.exp %180 : vector<2x1xf32>
      %182 = vector.broadcast %179 : vector<2x1xf32> to vector<2x8xf32>
      %183 = arith.subf %176, %182 : vector<2x8xf32>
      %184 = math.exp %183 : vector<2x8xf32>
      %cst_82 = arith.constant dense<0.000000e+00> : vector<2xf32>
      %185 = vector.multi_reduction <add>, %184, %cst_82 [1] : vector<2x8xf32> to vector<2xf32>
      %186 = vector.shape_cast %185 : vector<2xf32> to vector<2x1xf32>
      %187 = arith.addf %181, %186 : vector<2x1xf32>
      %188 = math.log %187 : vector<2x1xf32>
      %189 = arith.addf %179, %188 : vector<2x1xf32>
      %190 = arith.subf %189, %170 : vector<2x1xf32>
      %191 = vector.shape_cast %190 : vector<2x1xf32> to vector<1x2x1xf32>
      %cst_83 = arith.constant dense<0.000000e+00> : vector<1xf32>
      %192 = vector.multi_reduction <add>, %191, %cst_83 [1, 2] : vector<1x2x1xf32> to vector<1xf32>
      %193 = vector.shape_cast %192 : vector<1xf32> to vector<1x1x1xf32>
      %194 = vector.extract %193[0, 0, 0] : f32 from vector<1x1x1xf32>
      %cst_84 = arith.constant 5.000000e-01 : f32
      %195 = arith.mulf %194, %cst_84 : f32
      %196 = arith.addf %165, %195 : f32
      %c0_85 = arith.constant 0 : index
      %c0_86 = arith.constant 0 : index
      %197 = vector.load %arg8[%c0_85, %c0_86] : memref<4x32xf32, #tpu.memory_space<vmem>>, vector<4x32xf32>
      %198 = arith.mulf %197, %197 : vector<4x32xf32>
      %cst_87 = arith.constant dense<0.000000e+00> : vector<4xf32>
      %199 = vector.multi_reduction <add>, %198, %cst_87 [1] : vector<4x32xf32> to vector<4xf32>
      %200 = vector.shape_cast %199 : vector<4xf32> to vector<4x1xf32>
      %cst_88 = arith.constant 1.000000e-24 : f32
      %201 = vector.broadcast %cst_88 : f32 to vector<4x1xf32>
      %202 = arith.maximumf %200, %201 : vector<4x1xf32>
      %203 = math.rsqrt %202 : vector<4x1xf32>
      %204 = vector.broadcast %203 : vector<4x1xf32> to vector<4x32xf32>
      %205 = arith.mulf %197, %204 : vector<4x32xf32>
      %c0_89 = arith.constant 0 : index
      %c0_90 = arith.constant 0 : index
      %206 = vector.load %arg9[%c0_89, %c0_90] : memref<4x32xf32, #tpu.memory_space<vmem>>, vector<4x32xf32>
      %207 = arith.mulf %206, %206 : vector<4x32xf32>
      %cst_91 = arith.constant dense<0.000000e+00> : vector<4xf32>
      %208 = vector.multi_reduction <add>, %207, %cst_91 [1] : vector<4x32xf32> to vector<4xf32>
      %209 = vector.shape_cast %208 : vector<4xf32> to vector<4x1xf32>
      %cst_92 = arith.constant 1.000000e-24 : f32
      %210 = vector.broadcast %cst_92 : f32 to vector<4x1xf32>
      %211 = arith.maximumf %209, %210 : vector<4x1xf32>
      %212 = math.rsqrt %211 : vector<4x1xf32>
      %213 = vector.broadcast %212 : vector<4x1xf32> to vector<4x32xf32>
      %214 = arith.mulf %206, %213 : vector<4x32xf32>
      %c0_93 = arith.constant 0 : index
      %c0_94 = arith.constant 0 : index
      %c0_95 = arith.constant 0 : index
      %215 = vector.load %arg10[%c0_93, %c0_94, %c0_95] : memref<4x8x32xf32, #tpu.memory_space<vmem>>, vector<4x8x32xf32>
      %216 = arith.mulf %215, %215 : vector<4x8x32xf32>
      %cst_96 = arith.constant dense<0.000000e+00> : vector<4x8xf32>
      %217 = vector.multi_reduction <add>, %216, %cst_96 [2] : vector<4x8x32xf32> to vector<4x8xf32>
      %218 = vector.shape_cast %217 : vector<4x8xf32> to vector<4x8x1xf32>
      %cst_97 = arith.constant 1.000000e-24 : f32
      %219 = vector.broadcast %cst_97 : f32 to vector<4x8x1xf32>
      %220 = arith.maximumf %218, %219 : vector<4x8x1xf32>
      %221 = math.rsqrt %220 : vector<4x8x1xf32>
      %222 = vector.broadcast %221 : vector<4x8x1xf32> to vector<4x8x32xf32>
      %223 = arith.mulf %215, %222 : vector<4x8x32xf32>
      %224 = arith.mulf %205, %214 : vector<4x32xf32>
      %cst_98 = arith.constant dense<0.000000e+00> : vector<4xf32>
      %225 = vector.multi_reduction <add>, %224, %cst_98 [1] : vector<4x32xf32> to vector<4xf32>
      %226 = vector.shape_cast %225 : vector<4xf32> to vector<4x1xf32>
      %cst_99 = arith.constant 14.2857141 : f32
      %227 = vector.broadcast %cst_99 : f32 to vector<4x1xf32>
      %228 = arith.mulf %226, %227 : vector<4x1xf32>
      %229 = vector.shape_cast %205 : vector<4x32xf32> to vector<4x1x32xf32>
      %230 = vector.broadcast %229 : vector<4x1x32xf32> to vector<4x8x32xf32>
      %231 = arith.mulf %230, %223 : vector<4x8x32xf32>
      %cst_100 = arith.constant dense<0.000000e+00> : vector<4x8xf32>
      %232 = vector.multi_reduction <add>, %231, %cst_100 [2] : vector<4x8x32xf32> to vector<4x8xf32>
      %cst_101 = arith.constant 14.2857141 : f32
      %233 = vector.broadcast %cst_101 : f32 to vector<4x8xf32>
      %234 = arith.mulf %232, %233 : vector<4x8xf32>
      %cst_102 = arith.constant dense<0xFF800000> : vector<4xf32>
      %235 = vector.multi_reduction <maximumf>, %234, %cst_102 [1] : vector<4x8xf32> to vector<4xf32>
      %236 = vector.shape_cast %235 : vector<4xf32> to vector<4x1xf32>
      %237 = arith.maximumf %228, %236 : vector<4x1xf32>
      %238 = arith.subf %228, %237 : vector<4x1xf32>
      %239 = math.exp %238 : vector<4x1xf32>
      %240 = vector.broadcast %237 : vector<4x1xf32> to vector<4x8xf32>
      %241 = arith.subf %234, %240 : vector<4x8xf32>
      %242 = math.exp %241 : vector<4x8xf32>
      %cst_103 = arith.constant dense<0.000000e+00> : vector<4xf32>
      %243 = vector.multi_reduction <add>, %242, %cst_103 [1] : vector<4x8xf32> to vector<4xf32>
      %244 = vector.shape_cast %243 : vector<4xf32> to vector<4x1xf32>
      %245 = arith.addf %239, %244 : vector<4x1xf32>
      %246 = math.log %245 : vector<4x1xf32>
      %247 = arith.addf %237, %246 : vector<4x1xf32>
      %248 = arith.subf %247, %228 : vector<4x1xf32>
      %249 = vector.shape_cast %248 : vector<4x1xf32> to vector<1x4x1xf32>
      %cst_104 = arith.constant dense<0.000000e+00> : vector<1xf32>
      %250 = vector.multi_reduction <add>, %249, %cst_104 [1, 2] : vector<1x4x1xf32> to vector<1xf32>
      %251 = vector.shape_cast %250 : vector<1xf32> to vector<1x1x1xf32>
      %252 = vector.extract %251[0, 0, 0] : f32 from vector<1x1x1xf32>
      %cst_105 = arith.constant 2.500000e-01 : f32
      %253 = arith.mulf %252, %cst_105 : f32
      %c0_106 = arith.constant 0 : index
      %c0_107 = arith.constant 0 : index
      %254 = vector.load %arg15[%c0_106, %c0_107] : memref<2x128xf32, #tpu.memory_space<vmem>>, vector<1x128xf32>
      %255 = vector.shape_cast %254 : vector<1x128xf32> to vector<1x1x128xf32>
      %cst_108 = arith.constant dense<0.000000e+00> : vector<1xf32>
      %256 = vector.multi_reduction <add>, %255, %cst_108 [1, 2] : vector<1x1x128xf32> to vector<1xf32>
      %257 = vector.shape_cast %256 : vector<1xf32> to vector<1x1x1xf32>
      %258 = vector.extract %257[0, 0, 0] : f32 from vector<1x1x1xf32>
      %cst_109 = arith.constant 1.22070313E-4 : f32
      %259 = arith.mulf %258, %cst_109 : f32
      %c1_110 = arith.constant 1 : index
      %c0_111 = arith.constant 0 : index
      %260 = vector.load %arg15[%c1_110, %c0_111] : memref<2x128xf32, #tpu.memory_space<vmem>>, vector<1x128xf32>
      %261 = vector.shape_cast %260 : vector<1x128xf32> to vector<1x1x128xf32>
      %cst_112 = arith.constant dense<0.000000e+00> : vector<1xf32>
      %262 = vector.multi_reduction <add>, %261, %cst_112 [1, 2] : vector<1x1x128xf32> to vector<1xf32>
      %263 = vector.shape_cast %262 : vector<1xf32> to vector<1x1x1xf32>
      %264 = vector.extract %263[0, 0, 0] : f32 from vector<1x1x1xf32>
      %cst_113 = arith.constant 1.22070313E-4 : f32
      %265 = arith.mulf %264, %cst_113 : f32
      %266 = arith.addf %259, %265 : f32
      %cst_114 = arith.constant 0.00999999977 : f32
      %267 = arith.mulf %cst_114, %196 : f32
      %268 = arith.addf %51, %267 : f32
      %cst_115 = arith.constant 1.000000e-01 : f32
      %269 = arith.mulf %cst_115, %253 : f32
      %270 = arith.addf %268, %269 : f32
      %cst_116 = arith.constant 5.000000e-01 : f32
      %271 = arith.mulf %cst_116, %71 : f32
      %272 = arith.addf %270, %271 : f32
      %cst_117 = arith.constant 1.000000e+00 : f32
      %273 = arith.mulf %cst_117, %266 : f32
      %274 = arith.addf %272, %273 : f32
      %275 = tpu.iota {dimensions = array<i32: 1>} : vector<1x128xi32>
      %cst_118 = arith.constant 0.000000e+00 : f32
      %276 = vector.broadcast %cst_118 : f32 to vector<1x128xf32>
      %c0_i32_119 = arith.constant 0 : i32
      %277 = vector.broadcast %c0_i32_119 : i32 to vector<1x128xi32>
      %278 = arith.cmpi eq, %275, %277 : vector<1x128xi32>
      %279 = vector.broadcast %274 : f32 to vector<1x128xf32>
      %280 = arith.select %278, %279, %276 : vector<1x128xi1>, vector<1x128xf32>
      %c1_i32 = arith.constant 1 : i32
      %281 = vector.broadcast %c1_i32 : i32 to vector<1x128xi32>
      %282 = arith.cmpi eq, %275, %281 : vector<1x128xi32>
      %283 = vector.broadcast %51 : f32 to vector<1x128xf32>
      %284 = arith.select %282, %283, %280 : vector<1x128xi1>, vector<1x128xf32>
      %c2_i32 = arith.constant 2 : i32
      %285 = vector.broadcast %c2_i32 : i32 to vector<1x128xi32>
      %286 = arith.cmpi eq, %275, %285 : vector<1x128xi32>
      %287 = vector.broadcast %196 : f32 to vector<1x128xf32>
      %288 = arith.select %286, %287, %284 : vector<1x128xi1>, vector<1x128xf32>
      %c3_i32_120 = arith.constant 3 : i32
      %289 = vector.broadcast %c3_i32_120 : i32 to vector<1x128xi32>
      %290 = arith.cmpi eq, %275, %289 : vector<1x128xi32>
      %291 = vector.broadcast %253 : f32 to vector<1x128xf32>
      %292 = arith.select %290, %291, %288 : vector<1x128xi1>, vector<1x128xf32>
      %c4_i32 = arith.constant 4 : i32
      %293 = vector.broadcast %c4_i32 : i32 to vector<1x128xi32>
      %294 = arith.cmpi eq, %275, %293 : vector<1x128xi32>
      %295 = vector.broadcast %71 : f32 to vector<1x128xf32>
      %296 = arith.select %294, %295, %292 : vector<1x128xi1>, vector<1x128xf32>
      %c5_i32 = arith.constant 5 : i32
      %297 = vector.broadcast %c5_i32 : i32 to vector<1x128xi32>
      %298 = arith.cmpi eq, %275, %297 : vector<1x128xi32>
      %299 = vector.broadcast %259 : f32 to vector<1x128xf32>
      %300 = arith.select %298, %299, %296 : vector<1x128xi1>, vector<1x128xf32>
      %c6_i32 = arith.constant 6 : i32
      %301 = vector.broadcast %c6_i32 : i32 to vector<1x128xi32>
      %302 = arith.cmpi eq, %275, %301 : vector<1x128xi32>
      %303 = vector.broadcast %265 : f32 to vector<1x128xf32>
      %304 = arith.select %302, %303, %300 : vector<1x128xi1>, vector<1x128xf32>
      %c7_i32 = arith.constant 7 : i32
      %305 = vector.broadcast %c7_i32 : i32 to vector<1x128xi32>
      %306 = arith.cmpi eq, %275, %305 : vector<1x128xi32>
      %307 = vector.broadcast %266 : f32 to vector<1x128xf32>
      %308 = arith.select %306, %307, %304 : vector<1x128xi1>, vector<1x128xf32>
      %c0_121 = arith.constant 0 : index
      %c0_122 = arith.constant 0 : index
      %309 = vector.load %arg14[%c0_121, %c0_122] : memref<1x128xf32, #tpu.memory_space<vmem>>, vector<1x128xf32>
      tpu.vector_store %arg14[%c0_121, %c0_122], %308 {strides = array<i32>} : memref<1x128xf32, #tpu.memory_space<vmem>>, vector<1x128xf32>,
    } else {
    }
    return
  }
  func.func @transform_0(%arg0: i32) -> (i32, i32) {
    %c0_i32 = arith.constant 0 : i32
    %c0_i32_0 = arith.constant 0 : i32
    %c0_i32_1 = arith.constant 0 : i32
    return %c0_i32, %c0_i32_0 : i32, i32
  }
  func.func @transform_1(%arg0: i32) -> (i32, i32) {
    %c0_i32 = arith.constant 0 : i32
    %c0_i32_0 = arith.constant 0 : i32
    %c0_i32_1 = arith.constant 0 : i32
    return %c0_i32, %c0_i32_0 : i32, i32
  }
  func.func @transform_2(%arg0: i32) -> (i32, i32) {
    %c0_i32 = arith.constant 0 : i32
    %c0_i32_0 = arith.constant 0 : i32
    %c0_i32_1 = arith.constant 0 : i32
    return %c0_i32, %c0_i32_0 : i32, i32
  }
  func.func @transform_3(%arg0: i32) -> (i32, i32, i32) {
    %c0_i32 = arith.constant 0 : i32
    %c0_i32_0 = arith.constant 0 : i32
    %c0_i32_1 = arith.constant 0 : i32
    %c0_i32_2 = arith.constant 0 : i32
    return %c0_i32, %c0_i32_0, %c0_i32_1 : i32, i32, i32
  }
  func.func @transform_4(%arg0: i32) -> (i32, i32, i32) {
    %c0_i32 = arith.constant 0 : i32
    %c0_i32_0 = arith.constant 0 : i32
    %c0_i32_1 = arith.constant 0 : i32
    %c0_i32_2 = arith.constant 0 : i32
    return %c0_i32, %c0_i32_0, %c0_i32_1 : i32, i32, i32
  }
  func.func @transform_5(%arg0: i32) -> (i32, i32, i32) {
    %c0_i32 = arith.constant 0 : i32
    %c0_i32_0 = arith.constant 0 : i32
    %c0_i32_1 = arith.constant 0 : i32
    %c0_i32_2 = arith.constant 0 : i32
    return %c0_i32, %c0_i32_0, %c0_i32_1 : i32, i32, i32
  }
  func.func @transform_6(%arg0: i32) -> (i32, i32, i32) {
    %c0_i32 = arith.constant 0 : i32
    %c0_i32_0 = arith.constant 0 : i32
    %c0_i32_1 = arith.constant 0 : i32
    %c0_i32_2 = arith.constant 0 : i32
    return %c0_i32, %c0_i32_0, %c0_i32_1 : i32, i32, i32
  }
  func.func @transform_7(%arg0: i32) -> (i32, i32) {
    %c0_i32 = arith.constant 0 : i32
    %c0_i32_0 = arith.constant 0 : i32
    %c0_i32_1 = arith.constant 0 : i32
    return %c0_i32, %c0_i32_0 : i32, i32
  }
  func.func @transform_8(%arg0: i32) -> (i32, i32) {
    %c0_i32 = arith.constant 0 : i32
    %c0_i32_0 = arith.constant 0 : i32
    %c0_i32_1 = arith.constant 0 : i32
    return %c0_i32, %c0_i32_0 : i32, i32
  }
  func.func @transform_9(%arg0: i32) -> (i32, i32, i32) {
    %c0_i32 = arith.constant 0 : i32
    %c0_i32_0 = arith.constant 0 : i32
    %c0_i32_1 = arith.constant 0 : i32
    %c0_i32_2 = arith.constant 0 : i32
    return %c0_i32, %c0_i32_0, %c0_i32_1 : i32, i32, i32
  }
  func.func @transform_10(%arg0: i32) -> (i32, i32) {
    %c0_i32 = arith.constant 0 : i32
    %c0_i32_0 = arith.constant 0 : i32
    return %arg0, %c0_i32 : i32, i32
  }
  func.func @transform_11(%arg0: i32) -> (i32, i32) {
    %c0_i32 = arith.constant 0 : i32
    %c0_i32_0 = arith.constant 0 : i32
    return %arg0, %c0_i32 : i32, i32
  }
  func.func @transform_12(%arg0: i32) -> (i32, i32) {
    %c0_i32 = arith.constant 0 : i32
    %c0_i32_0 = arith.constant 0 : i32
    return %arg0, %c0_i32 : i32, i32
  }
  func.func @transform_13(%arg0: i32) -> (i32, i32) {
    %c0_i32 = arith.constant 0 : i32
    %c0_i32_0 = arith.constant 0 : i32
    %c0_i32_1 = arith.constant 0 : i32
    return %c0_i32, %c0_i32_0 : i32, i32
  }
}

</mosaic_0001>

<bundles_post_ra>
// kernel: tpu_custom_call.1
= control target key start
LH: loop header
LB: loop body
LE: loop exit
PB: predicated region body
PF: predicated region fallthrough
CT: control target
= control target key end

     0   :  { %s2871_s0 = inlined_call_operand.hbm [shape: f32[2,8], index: 0, kind: input, shape index: {}]   ;;  %s2872_s1 = inlined_call_operand.hbm [shape: f32[2,8], index: 1, kind: input, shape index: {}]   ;;  %s2873_s2 = inlined_call_operand.hbm [shape: f32[2,8], index: 2, kind: input, shape index: {}]   ;;  %s2874_s3 = inlined_call_operand.hbm [shape: f32[2,8,32], index: 3, kind: input, shape index: {}]   ;;  %s2875_s4 = inlined_call_operand.hbm [shape: f32[2,8,32], index: 4, kind: input, shape index: {}]   ;;  %s2876_s5 = inlined_call_operand.hbm [shape: f32[2,8,32], index: 5, kind: input, shape index: {}]   ;;  %s2877_s6 = inlined_call_operand.hbm [shape: f32[2,8,32], index: 6, kind: input, shape index: {}]   ;;  %s2878_s7 = inlined_call_operand.vmem [shape: f32[4,32], index: 7, kind: input, shape index: {}]   ;;  %s2879_s8 = inlined_call_operand.vmem [shape: f32[4,32], index: 8, kind: input, shape index: {}]   ;;  %s2880_s9 = inlined_call_operand.hbm [shape: f32[4,8,32], index: 9, kind: input, shape index: {}]   ;;  %s2881_s10 = inlined_call_operand.hbm [shape: f32[64,128], index: 10, kind: input, shape index: {}]   ;;  %s2882_s11 = inlined_call_operand.hbm [shape: f32[64,128], index: 11, kind: input, shape index: {}]   ;;  %s2883_s12 = inlined_call_operand.hbm [shape: f32[64,128], index: 12, kind: input, shape index: {}]   ;;  %s2884_s13 = inlined_call_operand.hbm [shape: f32[1,128], index: 13, kind: output, shape index: {}]  }
   0x1   :  { %2906 = sst [smem:[#allocation32_spill]] %s2871_s0 }
   0x2   :  { %2907 = sst [smem:[#allocation33_spill]] %s2872_s1 }
   0x3   :  { %2908 = sst [smem:[#allocation34_spill]] %s2873_s2 }
   0x4   :  { %2909 = sst [smem:[#allocation35_spill]] %s2874_s3 }
   0x5   :  { %2910 = sst [smem:[#allocation36_spill]] %s2875_s4 }
   0x6   :  { %2911 = sst [smem:[#allocation37_spill]] %s2878_s7 }
   0x7   :  { %2912 = sst [smem:[#allocation38_spill]] %s2879_s8 }
   0x8   :  { %2913 = sst [smem:[#allocation39_spill]] %s2884_s13 }
   0x9   :  { %18 = vsyncpa [#allocation4], 0 }
   0xa   :  { %19 = vsyncpa [#allocation7], 0 }
   0xb   :  { %20 = vsyncpa [#allocation10], 0 }
   0xc   :  { %21 = vsyncpa [#allocation13], 0 }
   0xd   :  { %22 = vsyncpa [#allocation16], 0 }
   0xe   :  { %23 = vsyncpa [#allocation5], 0  ;;  %s2301_s25 = smov 0   ;;  %s2303_s26 = smov 0  }
   0xf   :  { %s2305_s27 = smov 0   ;;  %s2307_s28 = smov 0  }
  0x10 LB: > { %2914 = sst [smem:[#allocation28_spill]] %s2208_s27  ;;  %s2214_s29 = smov [#allocation3]   ;;  %s2212_s28 = sphi %s2307_s28, %s2954_s28   ;;  %s2208_s27 = sphi %s2305_s27, %s2956_s27   ;;  %s2204_s26 = sphi %s2303_s26, %s2958_s26   ;;  %s2200_s25 = sphi %s2301_s25, %s2957_s25  }
  0x11   : > { %s356_s30 = sshll.u32 %s2214_s29, 4  ;;  %s2322_s14 = sadd.s32 4294967295, %s2212_s28   ;;  %s357_s30 = int_to_ptr.vmem [resolvable:$true] %s356_s30 }
  0x12   : > { %p1578_p0 = scmp.ge.s32.totalorder %s2212_s28, 1  ;;  %p2888_p1 = scmp.eq.s32.totalorder %s2322_s14, 0 }
  0x13   : > { %p343_p2 = scmp.lt.s32.totalorder %s2212_s28, 5  ;;  %s2341_s17 = sadd.s32 1, %s2212_s28  }
  0x14   : > { %2917 = sst [smem:[#allocation29_spill]] %s2341_s17  ;;  %s246_s18 = sadd.s32 1, %s2208_s27 }
  0x15   : > { %p2328_p4 = pnand %p1578_p0, %p343_p2  ;;  %s243_s19 = ssub.s32 %s2212_s28, %s2341_s17 }
  0x16   : > { %s1849_s21 = scalar_lea.vmem %s357_s30, 32  ;;  %p1857_p11 = scmp.lt.s32.totalorder %s357_s30, %s357_s30 }
  0x17   : > { %s2915_s15 = scalar_select %p2328_p4, 1, 0 }
  0x18   : > { %p1674_p5 = pneg %p2328_p4  ;;  %p1850_p8 = scmp.ne.s32.totalorder %s357_s30, %s1849_s21 }
  0x19   : > { %p1858_p12 = scmp.lt.s32.totalorder %s1849_s21, %s1849_s21 }
  0x1a   : > { %p2336_p6 = pnand %p1674_p5, %p2888_p1 }
  0x1b   : > { %p1859_p13 = por %p1858_p12, %p1857_p11 }
  0x1c   : > { %s2916_s16 = scalar_select %p2336_p6, 1, 0 }
  0x1d   : > { %p2348_p7 = pneg %p2336_p6 }
  0x1f   : > { %s2918_s20 = scalar_select %p2348_p7, 1, 0 }
  0x20   : > { %p1852_p9 = pnand %p1850_p8, %p2348_p7 }
  0x22   : > { %p1853_p10 = pneg %p1852_p9 }
  0x24   : > { %p1860_p0 = pnand %p1859_p13, %p1853_p10 }
  0x26   : > { %1863 = shalt.err (!%p1860_p0)
}
  0x27   : > { %s2919_s0 = sld [smem:[#allocation32_spill]]  ;;  %p244_p2 = scmp.eq.s32.totalorder %s243_s19, 0 }
  0x28   : > { %p253_p5 = scmp.ne.s32.totalorder %s2208_s27, %s2204_s26  ;;  %p254_p8 = scmp.eq.s32.totalorder %s2212_s28, 0 }
  0x29   : > { %p259_p9 = scmp.ne.s32.totalorder %s2204_s26, %s2200_s25  ;;  %p1717_p12 = scmp.lt.s32.totalorder %s2212_s28, 4 }
  0x2a   : > { %s2365_s24 = scalar_select %p244_p2, %s2208_s27, %s246_s18  }
  0x2b   : > { %p255_p10 = por %p254_p8, %p253_p5  ;;  %p2369_p11 = por %p2888_p1, %p259_p9 }
  0x2c   : > { %2920 = sst [smem:[#allocation30_spill]] %s2365_s24  ;;  %s460_s21 = sand.u32 1, %s2212_s28  }
  0x2d   : > { %1677 = dma.hbm_to_vmem [thread:$0]  (!%p2336_p6), %s2919_s0, 32, %s357_s30, [#allocation4]  }
  0x2e   : > { %s2921_s29 = scalar_select %p2369_p11, 1, 0 }
  0x2f   : > { %s462_s22 = sand.u32 1, %s2208_s27   ;;  %s2379_s17 = sshll.u32 %s2212_s28, 8 }
  0x30   : > { %2922 = sst [smem:[#allocation31_spill]] %s2921_s29  ;;  %s2376_s23 = sshll.u32 %s462_s22, 4 }
  0x31   : > { %s2385_s25 = scalar_lea.hbm %s2881_s10, %s2379_s17  ;;  %s464_s18 = scalar_lea.vmem [#allocation17], %s2376_s23 }
  0x32   : > { %s471_s0 = sshll.u32 %s464_s18, 4  ;;  %p2388_p13 = pnand %p1717_p12, %p255_p10  ;;  %s2392_s0 = int_to_ptr.vmem [resolvable:$true] %s471_s0 }
  0x33   : > { %s2215_s28 = smov [#allocation6]   ;;  %s2396_s27 = scalar_lea.sflag [#allocation4], %s460_s21 }
  0x34   : > { %s2923_s24 = scalar_select %p2388_p13, 1, 0 }
  0x35   : > { %s2394_s22 = sshll.u32 %s2215_s28, 4  ;;  %s1864_s30 = scalar_lea.hbm %s2385_s25, 256  ;;  %s368_s22 = int_to_ptr.vmem [resolvable:$true] %s2394_s22 }
  0x36   : > { %p1865_p0 = scmp.ne.s32.totalorder %s2385_s25, %s1864_s30  ;;  %p2402_p2 = pneg %p2388_p13 }
  0x37   : > { %s1869_s8 = scalar_lea.hbm %s2881_s10, 1024  ;;  %p1870_p9 = scmp.lt.s32.totalorder %s2385_s25, %s2881_s10 }
  0x38   : > { %s2924_s19 = scalar_select %p2402_p2, 1, 0 }
  0x39   : > { %p1867_p5 = pnand %p2402_p2, %p1865_p0  ;;  %p1871_p10 = scmp.lt.s32.totalorder %s1869_s8, %s1864_s30 }
  0x3b   : > { %p1868_p8 = pneg %p1867_p5  ;;  %p1872_p12 = por %p1871_p10, %p1870_p9 }
  0x3d   : > { %p1873_p3 = pnand %p1872_p12, %p1868_p8 }
  0x3f   : > { %1876 = shalt.err (!%p1873_p3)
}
  0x40   : > { %s1877_s21 = scalar_lea.vmem %s2392_s0, 256  ;;  %s2216_s29 = smov [#allocation17]  }
  0x41   : > { %p1878_p1 = scmp.ne.s32.totalorder %s2392_s0, %s1877_s21  ;;  %s1882_s13 = sshll.u32 %s2216_s29, 4  ;;  %s1883_s13 = int_to_ptr.vmem [resolvable:$false] %s1882_s13 }
  0x42   : > { %s1884_s18 = scalar_lea.vmem %s1883_s13, 512  ;;  %p1885_p11 = scmp.lt.s32.totalorder %s2392_s0, %s1883_s13 }
  0x43   : > { %p1880_p0 = pnand %p1878_p1, %p2402_p2  ;;  %p1886_p4 = scmp.lt.s32.totalorder %s1884_s18, %s1877_s21 }
  0x45   : > { %p1881_p5 = pneg %p1880_p0  ;;  %p1887_p6 = por %p1886_p4, %p1885_p11 }
  0x47   : > { %p1888_p7 = pnand %p1887_p6, %p1881_p5 }
  0x49   : > { %1891 = shalt.err (!%p1888_p7)
}
  0x4a   : > { %s2897_s7 = smov 128   ;;  %s2899_s8 = smov 8  }
  0x4b   : > { %1702 = dma.hbm_to_vmem [thread:$0]  (!%p2388_p13), %s2385_s25, 256, %s2392_s0, %s2396_s27, %s2897_s7, %s2897_s7, %s2899_s8  }
  0x4c   : > { %s1903_s29 = scalar_lea.vmem %s368_s22, 32  ;;  %p2925_p3 = scmp.ne.s32.totalorder %s2918_s20, 0 }
  0x4d   : > { %p1904_p1 = scmp.ne.s32.totalorder %s368_s22, %s1903_s29  ;;  %p1911_p7 = scmp.lt.s32.totalorder %s368_s22, %s368_s22 }
  0x4e   : > { %p1912_p11 = scmp.lt.s32.totalorder %s1903_s29, %s1903_s29 }
  0x4f   : > { %p1906_p4 = pnand %p1904_p1, %p2925_p3 }
  0x50   : > { %p1913_p8 = por %p1912_p11, %p1911_p7 }
  0x51   : > { %p1907_p6 = pneg %p1906_p4 }
  0x53   : > { %p1914_p9 = pnand %p1913_p8, %p1907_p6 }
  0x55   : > { %1917 = shalt.err (!%p1914_p9)
}
  0x56   : > { %p2926_p10 = scmp.ne.s32.totalorder %s2916_s16, 0  ;;  %s2927_s1 = sld [smem:[#allocation33_spill]] }
  0x57   : > { %s2219_s21 = smov [#allocation9]   ;;  %s2220_s25 = smov [#allocation12]  }
  0x58   : > { %s388_s0 = sshll.u32 %s2219_s21, 4  ;;  %s414_s13 = sshll.u32 %s2220_s25, 4  ;;  %s389_s0 = int_to_ptr.vmem [resolvable:$true] %s388_s0  ;;  %s415_s13 = int_to_ptr.vmem [resolvable:$true] %s414_s13 }
  0x59   : > { %s1929_s18 = scalar_lea.vmem %s389_s0, 256  ;;  %p1937_p1 = scmp.lt.s32.totalorder %s389_s0, %s389_s0 }
  0x5a   : > { %p1930_p12 = scmp.ne.s32.totalorder %s389_s0, %s1929_s18  ;;  %p1938_p4 = scmp.lt.s32.totalorder %s1929_s18, %s1929_s18 }
  0x5c   : > { %1680 = dma.hbm_to_vmem [thread:$0]  (!%p2926_p10), %s2927_s1, 32, %s368_s22, [#allocation7]  }
  0x5d   : > { %p1932_p0 = pnand %p1930_p12, %p2925_p3  ;;  %p1939_p6 = por %p1938_p4, %p1937_p1 }
  0x5f   : > { %p1933_p5 = pneg %p1932_p0 }
  0x61   : > { %p1940_p7 = pnand %p1939_p6, %p1933_p5 }
  0x63   : > { %1943 = shalt.err (!%p1940_p7)
}
  0x64   : > { %s2928_s3 = sld [smem:[#allocation35_spill]]  ;;  %s1955_s30 = scalar_lea.vmem %s415_s13, 256 }
  0x65   : > { %p1956_p11 = scmp.ne.s32.totalorder %s415_s13, %s1955_s30  ;;  %p1963_p12 = scmp.lt.s32.totalorder %s415_s13, %s415_s13 }
  0x66   : > { %p1964_p0 = scmp.lt.s32.totalorder %s1955_s30, %s1955_s30 }
  0x67   : > { %p1958_p8 = pnand %p1956_p11, %p2925_p3 }
  0x68   : > { %p1965_p5 = por %p1964_p0, %p1963_p12 }
  0x69   : > { %p1959_p9 = pneg %p1958_p8 }
  0x6a   : > { %1686 = dma.hbm_to_vmem [thread:$0]  (!%p2926_p10), %s2928_s3, 256, %s389_s0, [#allocation10], %s2897_s7, %s2897_s7, %s2899_s8  }
  0x6b   : > { %p1966_p1 = pnand %p1965_p5, %p1959_p9 }
  0x6d   : > { %1969 = shalt.err (!%p1966_p1)
}
  0x6e   : > { %1692 = dma.hbm_to_vmem [thread:$0]  (!%p2926_p10), %s2876_s5, 256, %s415_s13, [#allocation13], %s2897_s7, %s2897_s7, %s2899_s8  }
  0x6f   : > { %s2460_s18 = scalar_lea.hbm %s2882_s11, %s2379_s17  ;;  %s485_s22 = scalar_lea.vmem [#allocation18], %s2376_s23 }
  0x70   : > { %s492_s29 = sshll.u32 %s485_s22, 4  ;;  %s1970_s30 = scalar_lea.hbm %s2460_s18, 256  ;;  %s493_s29 = int_to_ptr.vmem [resolvable:$true] %s492_s29 }
  0x71   : > { %p1971_p4 = scmp.ne.s32.totalorder %s2460_s18, %s1970_s30  ;;  %s1975_s13 = scalar_lea.hbm %s2882_s11, 1024 }
  0x72   : > { %p1976_p11 = scmp.lt.s32.totalorder %s2460_s18, %s2882_s11  ;;  %p1977_p8 = scmp.lt.s32.totalorder %s1975_s13, %s1970_s30 }
  0x73   : > { %p1973_p6 = pnand %p1971_p4, %p2402_p2 }
  0x74   : > { %p1978_p9 = por %p1977_p8, %p1976_p11 }
  0x75   : > { %p1974_p7 = pneg %p1973_p6 }
  0x77   : > { %p1979_p12 = pnand %p1978_p9, %p1974_p7 }
  0x79   : > { %1982 = shalt.err (!%p1979_p12)
}
  0x7a   : > { %s1983_s0 = scalar_lea.vmem %s493_s29, 256  ;;  %s2221_s25 = smov [#allocation18]  }
  0x7b   : > { %p1984_p0 = scmp.ne.s32.totalorder %s493_s29, %s1983_s0  ;;  %s1988_s22 = sshll.u32 %s2221_s25, 4  ;;  %s1989_s22 = int_to_ptr.vmem [resolvable:$false] %s1988_s22 }
  0x7c   : > { %s1990_s1 = scalar_lea.vmem %s1989_s22, 512  ;;  %p1991_p4 = scmp.lt.s32.totalorder %s493_s29, %s1989_s22 }
  0x7d   : > { %p1986_p5 = pnand %p1984_p0, %p2402_p2  ;;  %p1992_p6 = scmp.lt.s32.totalorder %s1990_s1, %s1983_s0 }
  0x7f   : > { %p1987_p1 = pneg %p1986_p5  ;;  %p1993_p10 = por %p1992_p6, %p1991_p4 }
  0x81   : > { %p1994_p3 = pnand %p1993_p10, %p1987_p1 }
  0x83   : > { %1997 = shalt.err (!%p1994_p3)
}
  0x84   : > { %s2929_s7 = smov 8   ;;  %s2930_s8 = smov 128  }
  0x85   : > { %1705 = dma.hbm_to_vmem [thread:$0]  (!%p2388_p13), %s2460_s18, 256, %s493_s29, %s2396_s27, %s2930_s8, %s2930_s8, %s2929_s7  }
  0x86   : > { %s2222_s30 = smov [#allocation8]   ;;  %s2223_s21 = smov [#allocation11]  }
  0x87   : > { %s378_s28 = sshll.u32 %s2222_s30, 4  ;;  %s401_s13 = sshll.u32 %s2223_s21, 4  ;;  %s379_s28 = int_to_ptr.vmem [resolvable:$true] %s378_s28  ;;  %s402_s13 = int_to_ptr.vmem [resolvable:$true] %s401_s13 }
  0x88   : > { %s2009_s25 = scalar_lea.vmem %s379_s28, 32  ;;  %p2931_p11 = scmp.ne.s32.totalorder %s2918_s20, 0 }
  0x89   : > { %p2010_p7 = scmp.ne.s32.totalorder %s379_s28, %s2009_s25  ;;  %p2017_p3 = scmp.lt.s32.totalorder %s379_s28, %s379_s28 }
  0x8a   : > { %p2018_p9 = scmp.lt.s32.totalorder %s2009_s25, %s2009_s25 }
  0x8b   : > { %p2012_p8 = pnand %p2010_p7, %p2931_p11 }
  0x8c   : > { %p2019_p12 = por %p2018_p9, %p2017_p3 }
  0x8d   : > { %p2013_p10 = pneg %p2012_p8 }
  0x8f   : > { %p2020_p0 = pnand %p2019_p12, %p2013_p10 }
  0x91   : > { %2023 = shalt.err (!%p2020_p0)
}
  0x92   : > { %p2932_p5 = scmp.ne.s32.totalorder %s2916_s16, 0  ;;  %s2933_s2 = sld [smem:[#allocation34_spill]] }
  0x93   : > { %s2035_s18 = scalar_lea.vmem %s402_s13, 256  ;;  %p2043_p7 = scmp.lt.s32.totalorder %s402_s13, %s402_s13 }
  0x94   : > { %p2036_p1 = scmp.ne.s32.totalorder %s402_s13, %s2035_s18  ;;  %p2044_p8 = scmp.lt.s32.totalorder %s2035_s18, %s2035_s18 }
  0x96   : > { %p2038_p4 = pnand %p2036_p1, %p2931_p11  ;;  %p2045_p13 = por %p2044_p8, %p2043_p7 }
  0x98   : > { %1683 = dma.hbm_to_vmem [thread:$0]  (!%p2932_p5), %s2933_s2, 32, %s379_s28, [#allocation7]  }
  0x99   : > { %p2039_p6 = pneg %p2038_p4 }
  0x9b   : > { %p2046_p2 = pnand %p2045_p13, %p2039_p6 }
  0x9d   : > { %2049 = shalt.err (!%p2046_p2)
}
  0x9e   : > { %s2934_s4 = sld [smem:[#allocation36_spill]]  ;;  %s2224_s30 = smov [#allocation14]  }
  0x9f   : > { %s427_s28 = sshll.u32 %s2224_s30, 4  ;;  %s2225_s21 = smov [#allocation15]   ;;  %s428_s28 = int_to_ptr.vmem [resolvable:$true] %s427_s28 }
  0xa0   : > { %s446_s25 = sshll.u32 %s2225_s21, 4  ;;  %s2061_s1 = scalar_lea.vmem %s428_s28, 256  ;;  %s447_s25 = int_to_ptr.vmem [resolvable:$true] %s446_s25 }
  0xa1   : > { %p2062_p10 = scmp.ne.s32.totalorder %s428_s28, %s2061_s1  ;;  %p2069_p3 = scmp.lt.s32.totalorder %s428_s28, %s428_s28 }
  0xa2   : > { %p2070_p9 = scmp.lt.s32.totalorder %s2061_s1, %s2061_s1 }
  0xa3   : > { %p2064_p13 = pnand %p2062_p10, %p2931_p11 }
  0xa4   : > { %1689 = dma.hbm_to_vmem [thread:$0]  (!%p2932_p5), %s2934_s4, 256, %s402_s13, [#allocation10], %s2930_s8, %s2930_s8, %s2929_s7  }
  0xa5   : > { %p2065_p2 = pneg %p2064_p13  ;;  %p2071_p12 = por %p2070_p9, %p2069_p3 }
  0xa7   : > { %p2072_p0 = pnand %p2071_p12, %p2065_p2 }
  0xa9   : > { %2075 = shalt.err (!%p2072_p0)
}
  0xaa   : > { %1695 = dma.hbm_to_vmem [thread:$0]  (!%p2932_p5), %s2877_s6, 256, %s428_s28, [#allocation13], %s2930_s8, %s2930_s8, %s2929_s7  }
  0xab   : > { %s2087_s18 = scalar_lea.vmem %s447_s25, 512  ;;  %p2095_p7 = scmp.lt.s32.totalorder %s447_s25, %s447_s25 }
  0xac   : > { %p2088_p1 = scmp.ne.s32.totalorder %s447_s25, %s2087_s18  ;;  %p2096_p8 = scmp.lt.s32.totalorder %s2087_s18, %s2087_s18 }
  0xae   : > { %p2090_p4 = pnand %p2088_p1, %p2931_p11  ;;  %p2097_p10 = por %p2096_p8, %p2095_p7 }
  0xb0   : > { %p2091_p6 = pneg %p2090_p4 }
  0xb2   : > { %p2098_p13 = pnand %p2097_p10, %p2091_p6 }
  0xb4   : > { %2101 = shalt.err (!%p2098_p13)
}
  0xb5   : > { %1698 = dma.hbm_to_vmem [thread:$0]  (!%p2932_p5), %s2880_s9, 512, %s447_s25, [#allocation16], %s2930_s8, %s2930_s8, %s2929_s7  }
  0xb6   : > { %s2524_s28 = scalar_lea.hbm %s2883_s12, %s2379_s17  ;;  %s506_s21 = scalar_lea.vmem [#allocation19], %s2376_s23 }
  0xb7   : > { %s513_s16 = sshll.u32 %s506_s21, 4  ;;  %s2102_s1 = scalar_lea.hbm %s2524_s28, 256  ;;  %s514_s16 = int_to_ptr.vmem [resolvable:$true] %s513_s16 }
  0xb8   : > { %p2103_p11 = scmp.ne.s32.totalorder %s2524_s28, %s2102_s1  ;;  %p2935_p2 = scmp.ne.s32.totalorder %s2924_s19, 0 }
  0xb9   : > { %s2107_s25 = scalar_lea.hbm %s2883_s12, 1024  ;;  %p2108_p5 = scmp.lt.s32.totalorder %s2524_s28, %s2883_s12 }
  0xba   : > { %p2105_p3 = pnand %p2103_p11, %p2935_p2  ;;  %p2109_p12 = scmp.lt.s32.totalorder %s2107_s25, %s2102_s1 }
  0xbc   : > { %p2106_p9 = pneg %p2105_p3  ;;  %p2110_p0 = por %p2109_p12, %p2108_p5 }
  0xbe   : > { %p2111_p1 = pnand %p2110_p0, %p2106_p9 }
  0xc0   : > { %2114 = shalt.err (!%p2111_p1)
}
  0xc1   : > { %s2115_s17 = scalar_lea.vmem %s514_s16, 256  ;;  %s2226_s23 = smov [#allocation19]  }
  0xc2   : > { %p2116_p4 = scmp.ne.s32.totalorder %s514_s16, %s2115_s17  ;;  %s2120_s22 = sshll.u32 %s2226_s23, 4  ;;  %s2121_s22 = int_to_ptr.vmem [resolvable:$false] %s2120_s22 }
  0xc3   : > { %s2122_s20 = scalar_lea.vmem %s2121_s22, 512  ;;  %p2123_p8 = scmp.lt.s32.totalorder %s514_s16, %s2121_s22 }
  0xc4   : > { %p2118_p6 = pnand %p2116_p4, %p2935_p2  ;;  %p2124_p10 = scmp.lt.s32.totalorder %s2122_s20, %s2115_s17 }
  0xc6   : > { %p2119_p7 = pneg %p2118_p6  ;;  %p2125_p13 = por %p2124_p10, %p2123_p8 }
  0xc8   : > { %p2126_p11 = pnand %p2125_p13, %p2119_p7 }
  0xca   : > { %2129 = shalt.err (!%p2126_p11)
}
  0xcb   : > { %p2936_p3 = scmp.ne.s32.totalorder %s2923_s24, 0  ;;  %p2937_p2 = scmp.ne.s32.totalorder %s2915_s15, 0 }
  0xcc   : > { %p2938_p9 = scmp.eq.s32.totalorder (!%p2937_p2), %s2322_s14, 0 }
  0xcd   : > { %1708 = dma.hbm_to_vmem [thread:$0]  (!%p2936_p3), %s2524_s28, 256, %s514_s16, %s2396_s27, %s2930_s8, %s2930_s8, %s2929_s7  }
  0xce   : > { %525 = sbr.rel (%p2937_p2) target bundleno = 1330 (0x532), region = 72 }
  0xd3   : > { %2171 = dma.done.wait (%p2938_p9), [#allocation4], 32   ;;  %p2939_p5 = pmov %p2938_p9 }
  0xd5   : > { %2173 = vsyncadd (%p2939_p5), [#allocation4], 4294967264  ;;  %p2940_p12 = pmov %p2939_p5 }
  0xd6   : > { %p2941_p0 = pmov %p2939_p5 }
  0xd7   : > { %2175 = dma.done.wait (%p2940_p12), [#allocation7], 64  }
  0xd8   : > { %2177 = vsyncadd (%p2941_p0), [#allocation7], 4294967232  ;;  %p2942_p1 = pmov %p2941_p0 }
  0xd9   : > { %p2943_p4 = pmov %p2941_p0 }
  0xda   : > { %2179 = dma.done.wait (%p2942_p1), [#allocation10], 512  }
  0xdb   : > { %2181 = vsyncadd (%p2943_p4), [#allocation10], 4294966784  ;;  %p2944_p6 = pmov %p2941_p0 }
  0xdc   : > { %p2945_p7 = pmov %p2941_p0 }
  0xdd   : > { %2183 = dma.done.wait (%p2944_p6), [#allocation13], 512  }
  0xde   : > { %2185 = vsyncadd (%p2945_p7), [#allocation13], 4294966784  ;;  %p2946_p8 = pmov %p2941_p0 }
  0xdf   : > { %p2947_p10 = pmov %p2941_p0 }
  0xe0   : > { %2187 = dma.done.wait (%p2946_p8), [#allocation16], 512  }
  0xe1   : > { %2189 = vsyncadd (%p2947_p10), [#allocation16], 4294966784  ;;  %s2948_s27 = sld [smem:[#allocation31_spill]]  ;;  %s559_s15 = sand.u32 1, %s2322_s14  }
  0xe2   : > { %s561_s24 = sand.u32 1, %s2204_s26   ;;  %s560_s7 = scalar_lea.sflag [#allocation4], %s559_s15 }
  0xe3   : > { %s1606_s19 = sshll.u32 %s561_s24, 4 }
  0xe4   : > { %s563_s8 = scalar_lea.vmem [#allocation17], %s1606_s19 }
  0xe7   : > { %p2949_p13 = scmp.ne.s32.totalorder %s2948_s27, 0 }
  0xe9   : > { %2191 = dma.done.wait (%p2949_p13), %s560_s7, 768  }
  0xea   : > { %2193 = vsyncadd (%p2949_p13), %s560_s7, 4294966528  ;;  %s572_s30 = scalar_lea.vmem [#allocation18], %s1606_s19  ;;  %s581_s28 = scalar_lea.vmem [#allocation19], %s1606_s19 }
  0xeb   : > { %p2950_p11 = scmp.ne.s32.totalorder %s2322_s14, 0 }
  0xed   : > { %635 = sbr.rel (%p2950_p11) target bundleno = 244 (0xf4), region = 120 }
  0xf2   : > { %v2227_v0 = vmov 0.0  }
  0xf3   : > { %636 = vst [vmem:[#allocation2] sm:$0x3] %v2227_v0 }
  0xf4 PF: > { %v637_v1 = vld [vmem:[%s563_s8] sm:$0xff]  ;;  %v638_v2 = vld [vmem:[%s563_s8 + $0x8] sm:$0xff]  ;;  %p1610_p3 = scmp.ne.s32.totalorder %s2322_s14, 3 }
  0xf5   : > { %v639_v3 = vld [vmem:[%s572_s30] sm:$0xff]  ;;  %v640_v4 = vld [vmem:[%s572_s30 + $0x8] sm:$0xff]  ;;  %s2951_s1 = sld [smem:[#allocation37_spill]] (!%p1610_p3) }
  0xf6   : > { %v641_v5 = vsub.f32 %v637_v1, %v639_v3  ;;  %v643_v6 = vld [vmem:[%s581_s28] sm:$0xff]  ;;  %v642_v7 = vsub.f32 %v638_v2, %v640_v4  ;;  %v644_v8 = vld [vmem:[%s581_s28 + $0x8] sm:$0xff]  ;;  %s2952_s25 = sld [smem:[#allocation38_spill]] (!%p1610_p3) }
  0xf7   : > { %v645_v9 = vsub.f32 %v637_v1, %v643_v6  ;;  %v646_v11 = vsub.f32 %v638_v2, %v644_v8 }
  0xf8   : > { %v648_v10 = vmul.f32 %v641_v5, %v641_v5  ;;  %v649_v12 = vmul.f32 %v642_v7, %v642_v7 }
  0xf9   : > { %v660_v13 = vmul.f32 %v645_v9, %v645_v9  ;;  %v661_v14 = vmul.f32 %v646_v11, %v646_v11 }
  0xfa   : > { %v650_v15 = vadd.f32 %v649_v12, %v648_v10  ;;  %v647_v26 = vld [vmem:[#allocation2] sm:$0x1]  ;;  %v659_v29 = vld [vmem:[#allocation2 + $0x1] sm:$0x1] }
  0xfb   : > { %v662_v16 = vadd.f32 %v661_v14, %v660_v13 }
  0xfc   : > { %v651_v17 = vrot.slane %v650_v15, 4 }
  0xfd   : > { %v663_v18 = vrot.slane %v662_v16, 4 }
  0xfe   : > { %v652_v19 = vadd.f32 %v651_v17, %v650_v15 }
  0xff   : > { %v664_v20 = vadd.f32 %v663_v18, %v662_v16 }
 0x100   : > { %v653_v21 = vrot.slane %v652_v19, 2 }
 0x101   : > { %v665_v22 = vrot.slane %v664_v20, 2 }
 0x102   : > { %v654_v23 = vadd.f32 %v653_v21, %v652_v19 }
 0x103   : > { %v666_v24 = vadd.f32 %v665_v22, %v664_v20 }
 0x104   : > { %v655_v25 = vrot.slane %v654_v23, 1 }
 0x105   : > { %v667_v27 = vrot.slane %v666_v24, 1 }
 0x106   : > { %v656_v28 = vadd.f32 %v655_v25, %v654_v23 }
 0x107   : > { %v668_v30 = vadd.f32 %v667_v27, %v666_v24  ;;  %674 = sbr.rel (%p1610_p3) target bundleno = 1309 (0x51d), region = 124 }
 0x108   : > { %v657_v31 = vadd.f32 %v656_v28, %v647_v26 }
 0x109   : > { %v669_v32 = vadd.f32 %v668_v30, %v659_v29 }
 0x10a   : > { %658 = vst [vmem:[#allocation2] sm:$0x1] %v657_v31 }
 0x10b   : > { %670 = vst [vmem:[#allocation2 + $0x1] sm:$0x1] %v669_v32 }
 0x10c   : > { %v2581_v33 = vld [vmem:[%s2951_s1] sm:$0xf]  ;;  %vm1106_vm0 = vcmask 257024   ;;  %vm732_vm1 = vcmask 261120   ;;  %v2585_v35 = vld [vmem:[#allocation11] sm:$0xff]  ;;  %v728_v48 = vld [vmem:[#allocation12] sm:$0xff] }
 0x10d   : > { %v2583_v34 = vld [vmem:[#allocation11 + $0x8] sm:$0xff]  ;;  %v1105_v36 = vmul.f32 %v2581_v33, %v2581_v33  ;;  %v868_v39 = vmul.f32 %v2585_v35, %v2585_v35  ;;  %v2597_v41 = vld [vmem:[#allocation14] sm:$0xff]  ;;  %v769_v43 = vsel %vm732_vm1, %v2585_v35, 0.0  ;;  %v729_v57 = vld [vmem:[#allocation12 + $0x8] sm:$0xff]  ;;  %v802_v59 = vsel %vm732_vm1, %v728_v48, 0.0 }
 0x10e   : > { %v869_v37 = vmul.f32 %v2583_v34, %v2583_v34  ;;  %v776_v38 = vsel %vm732_vm1, %v2583_v34, 0.0  ;;  %v2595_v40 = vld [vmem:[#allocation14 + $0x8] sm:$0xff]  ;;  %v770_v47 = vrot.slane %v769_v43, 4  ;;  %v835_v52 = vsel %vm732_vm1, %v2597_v41, 0.0  ;;  %v724_v58 = vld [vmem:[#allocation9] sm:$0xff]  ;;  %v725_v0 = vld [vmem:[#allocation9 + $0x8] sm:$0xff] }
 0x10f   : > { %v777_v42 = vrot.slane %v776_v38, 4  ;;  %v842_v44 = vsel %vm732_vm1, %v2595_v40, 0.0  ;;  %v1107_v45 = vsel %vm1106_vm0, %v1105_v36, 0.0  ;;  %v870_v46 = vsel %vm732_vm1, %v868_v39, 0.0 }
 0x110   : > { %1108 = vadd.xlane.f32.xlu0 %v1107_v45  ;;  %v873_v49 = vsel %vm732_vm1, %v869_v37, 0.0  ;;  %871 = vadd.xlane.f32.xlu1 %v870_v46  ;;  %v843_v50 = vrot.slane %v842_v44, 4  ;;  %v883_v51 = vmul.f32 %v2595_v40, %v2595_v40  ;;  %v771_v54 = vadd.f32 %v770_v47, %v769_v43 }
 0x111   : > { %v778_v53 = vadd.f32 %v777_v42, %v776_v38  ;;  %v836_v55 = vrot.slane %v835_v52, 4  ;;  %v882_v56 = vmul.f32 %v2597_v41, %v2597_v41  ;;  %v803_v63 = vrot.slane %v802_v59, 4 }
 0x112   : > { %v844_v60 = vadd.f32 %v843_v50, %v842_v44  ;;  %v772_v1 = vrot.slane %v771_v54, 2  ;;  %v809_v2 = vsel %vm732_vm1, %v729_v57, 0.0  ;;  %v733_v3 = vsel %vm732_vm1, %v724_v58, 0.0 }
 0x113   : > { %v837_v61 = vadd.f32 %v836_v55, %v835_v52  ;;  %v884_v62 = vsel %vm732_vm1, %v882_v56, 0.0  ;;  %v779_v4 = vrot.slane %v778_v53, 2  ;;  %v887_v5 = vsel %vm732_vm1, %v883_v51, 0.0 }
 0x114   : > { %874 = vadd.xlane.f32.xlu0 %v873_v49  ;;  %885 = vadd.xlane.f32.xlu1 %v884_v62  ;;  %v804_v6 = vadd.f32 %v803_v63, %v802_v59  ;;  %v810_v7 = vrot.slane %v809_v2, 4  ;;  %v734_v9 = vrot.slane %v733_v3, 4  ;;  %v740_v10 = vsel %vm732_vm1, %v725_v0, 0.0  ;;  %v2624_v49 = vld [vmem:[#allocation15] sm:$0xff] }
 0x115   : > { %v838_v8 = vrot.slane %v837_v61, 2  ;;  %v845_v11 = vrot.slane %v844_v60, 2  ;;  %v741_v14 = vrot.slane %v740_v10, 4  ;;  %v773_v15 = vadd.f32 %v772_v1, %v771_v54  ;;  %v2632_v54 = vld [vmem:[#allocation15 + $0x8] sm:$0xff] }
 0x116   : > { %v805_v12 = vrot.slane %v804_v6, 2  ;;  %v811_v13 = vadd.f32 %v810_v7, %v809_v2  ;;  %v735_v16 = vadd.f32 %v734_v9, %v733_v3  ;;  %v780_v17 = vadd.f32 %v779_v4, %v778_v53  ;;  %v2651_v3 = vld [vmem:[#allocation15 + $0x18] sm:$0xff] }
 0x117   : > { %v742_v20 = vadd.f32 %v741_v14, %v740_v10  ;;  %v839_v21 = vadd.f32 %v838_v8, %v837_v61  ;;  %v846_v23 = vadd.f32 %v845_v11, %v844_v60  ;;  %v774_v28 = vrot.slane %v773_v15, 1  ;;  %v2641_v61 = vld [vmem:[#allocation15 + $0x10] sm:$0xff] }
 0x118   : > { %888 = vadd.xlane.f32.xlu0 %v887_v5  ;;  %v806_v18 = vadd.f32 %v805_v12, %v804_v6  ;;  %v812_v19 = vrot.slane %v811_v13, 2  ;;  %v736_v22 = vrot.slane %v735_v16, 2  ;;  %v781_v32 = vrot.slane %v780_v17, 1 }
 0x119   : > { %v743_v26 = vrot.slane %v742_v20, 2  ;;  %v840_v37 = vrot.slane %v839_v21, 1  ;;  %v847_v43 = vrot.slane %v846_v23, 1  ;;  %v775_v45 = vadd.f32 %v774_v28, %v773_v15 }
 0x11a   : > { %v807_v24 = vrot.slane %v806_v18, 1  ;;  %v813_v25 = vadd.f32 %v812_v19, %v811_v13  ;;  %v737_v27 = vadd.f32 %v736_v22, %v735_v16  ;;  %v782_v50 = vadd.f32 %v781_v32, %v780_v17  ;;  %v2677_v17 = vld [vmem:[%s2952_s25] sm:$0xf] }
 0x11b   : > { %v744_v31 = vadd.f32 %v743_v26, %v742_v20  ;;  %vm754_vm2 = vcmask 1041409   ;;  %vm757_vm3 = vcmask 254976   ;;  %v841_v55 = vadd.f32 %v840_v37, %v839_v21 }
 0x11c   : > { %v808_v29 = vadd.f32 %v807_v24, %v806_v18  ;;  %v814_v30 = vrot.slane %v813_v25, 1  ;;  %v738_v36 = vrot.slane %v737_v27, 1  ;;  %v848_v56 = vadd.f32 %v847_v43, %v846_v23 }
 0x11d   : > { %v745_v42 = vrot.slane %v744_v31, 1  ;;  %v1125_v58 = vmul.f32 %v2624_v49, %v2624_v49  ;;  %v2643_v62 = vmul.f32 0.125, %v775_v45  ;;  %v2645_v63 = vmul.f32 0.125, %v782_v50 }
 0x11e   : > { %v815_v38 = vadd.f32 %v814_v30, %v813_v25  ;;  %v2618_v39 = vmul.f32 0.125, %v808_v29  ;;  %v739_v44 = vadd.f32 %v738_v36, %v737_v27  ;;  %v1126_v1 = vmul.f32 %v2632_v54, %v2632_v54 }
 0x11f   : > { %v746_v48 = vadd.f32 %v745_v42, %v744_v31  ;;  %v2653_v4 = vmul.f32 0.125, %v841_v55  ;;  %v2655_v5 = vmul.f32 0.125, %v848_v56  ;;  %v1129_v7 = vsel %vm732_vm1, %v1125_v58, 0.0 }
 0x120   : > { %v2620_v46 = vmul.f32 0.125, %v815_v38  ;;  %v818_v47 = vmul.f32 %v2618_v39, %v2618_v39  ;;  %v2626_v51 = vmul.f32 0.125, %v739_v44  ;;  %v1127_v8 = vmul.f32 %v2641_v61, %v2641_v61 }
 0x121   : > { %v2630_v53 = vmul.f32 0.125, %v746_v48  ;;  %v785_v9 = vmul.f32 %v2643_v62, %v2643_v62  ;;  %v786_v10 = vmul.f32 %v2645_v63, %v2645_v63  ;;  %v1132_v11 = vsel %vm732_vm1, %v1126_v1, 0.0 }
 0x122   : > { %v819_v52 = vmul.f32 %v2620_v46, %v2620_v46  ;;  %v750_v57 = vmul.f32 %v2626_v51, %v2626_v51  ;;  %v1128_v12 = vmul.f32 %v2651_v3, %v2651_v3  ;;  %v851_v13 = vmul.f32 %v2653_v4, %v2653_v4 }
 0x123   : > { %v751_v60 = vmul.f32 %v2630_v53, %v2630_v53  ;;  %v852_v14 = vmul.f32 %v2655_v5, %v2655_v5  ;;  %v1135_v15 = vsel %vm732_vm1, %v1127_v8, 0.0  ;;  %v789_v16 = vsel %vm754_vm2, %v786_v10, %v785_v9 }
 0x124   : > { %v822_v59 = vsel %vm754_vm2, %v819_v52, %v818_v47  ;;  %v1138_v18 = vsel %vm732_vm1, %v1128_v12, 0.0  ;;  %v791_v20 = vsel %vm757_vm3, %v789_v16, 0.0  ;;  %v1114_v21 = vmul.f32 %v2677_v17, %v2677_v17 }
 0x125   : > { %v824_v0 = vsel %vm757_vm3, %v822_v59, 0.0  ;;  %v755_v2 = vsel %vm754_vm2, %v751_v60, %v750_v57  ;;  %v855_v19 = vsel %vm754_vm2, %v852_v14, %v851_v13  ;;  %v907_v30 = vlaneseq }
 0x126   : > { %825 = vadd.xlane.f32.xlu1 %v824_v0  ;;  %v758_v6 = vsel %vm757_vm3, %v755_v2, 0.0  ;;  %v857_v22 = vsel %vm757_vm3, %v855_v19, 0.0  ;;  %v1115_v23 = vsel %vm1106_vm0, %v1114_v21, 0.0  ;;  %v2228_v31 = vmov 1966171168  }
 0x127   : > { %759 = vadd.xlane.f32.xlu0 %v758_v6  ;;  %v1160_v32 = vunpack.c.l.s4 %v2228_v31  ;;  %v2687_v43 = vshrl.u32 %v907_v30, 7  ;;  %vm678_vm4 = vcmask 58368   ;;  %vm1244_vm5 = vcmask 1042434  }
 0x128   : > { %vm1246_vm6 = vcmask 1043459   ;;  %vm1249_vm7 = vcmask 60416   ;;  %vm989_vm8 = vcmask 1024   ;;  %vm1347_vm9 = vcmask 1040384  }
 0x129   : > { %v1161_v44 = vunpack.c.0.s8 %v1160_v32  ;;  %v2695_v13 = vsub.s32 0, %v2687_v43  ;;  %vm1334_vm10 = vcmask 3072  }
 0x12a   : > { %1130 = vadd.xlane.f32.xlu1 %v1129_v7 }
 0x12b   : > { %1133 = vadd.xlane.f32.xlu0 %v1132_v11  ;;  %v1164_v56 = vsub.s32 %v1161_v44, %v2687_v43 }
 0x12e   : > { %1136 = vadd.xlane.f32.xlu1 %v1135_v15 }
 0x12f   : > { %1139 = vadd.xlane.f32.xlu0 %v1138_v18 }
 0x132   : > { %792 = vadd.xlane.f32.xlu1 %v791_v20 }
 0x133   : > { %858 = vadd.xlane.f32.xlu0 %v857_v22 }
 0x136   : > { %1116 = vadd.xlane.f32.xlu1 %v1115_v23 }
 0x199   : > { %v1109_v24 = vpop.xlane.xlu0 %1108  ;;  %v872_v26 = vpop.xlane.xlu1 %871 }
 0x19a   : > { %v1110_v25 = vmax.f32 %v1109_v24, 1e-24  ;;  %v876_v57 = vmax.f32 %v872_v26, 1e-24 }
 0x19c   : > { %1776 = vrsqrt.f32 %v1110_v25 }
 0x19d   : > { %v875_v27 = vpop.xlane.xlu0 %874  ;;  %v886_v28 = vpop.xlane.xlu1 %885 }
 0x19e   : > { %v890_v38 = vmax.f32 %v886_v28, 1e-24  ;;  %v877_v60 = vmax.f32 %v875_v27, 1e-24 }
 0x1a1   : > { %v889_v29 = vpop.xlane.xlu0 %888 }
 0x1a2   : > { %v891_v48 = vmax.f32 %v889_v29, 1e-24 }
 0x1a9   : > { %v1777_v47 = vpop.eup %1776 }
 0x1aa   : > { %v2691_v59 = vmul.f32 %v1777_v47, %v2581_v33 }
 0x1ac   : > { %v1165_v7 = vrot.slane %v2691_v59, %v1164_v56 }
 0x1ae   : > { %v1166_v33 = vcombine.high %v1165_v7, %v1165_v7  ;;  %v1173_v14 = vrot.slane %v1165_v7, %v1164_v56 }
 0x1af   : > { %v826_v36 = vpop.xlane.xlu1 %825 }
 0x1b0   : > { %v827_v37 = vmax.f32 %v826_v36, 1e-24  ;;  %v760_v42 = vpop.xlane.xlu0 %759  ;;  %v1180_v19 = vrot.slane %v1166_v33, %v1164_v56  ;;  %v1186_v23 = vrot.slane %v1173_v14, %v2695_v13 }
 0x1b1   : > { %v761_v45 = vmax.f32 %v760_v42, 1e-24 }
 0x1b2   : > { %1778 = vrsqrt.f32 %v827_v37  ;;  %v1190_v37 = vrot.slane %v1180_v19, %v2695_v13 }
 0x1b3   : > { %v1131_v50 = vpop.xlane.xlu1 %1130  ;;  %1780 = vrsqrt.f32 %v761_v45 }
 0x1b4   : > { %v1141_v52 = vmax.f32 %v1131_v50, 1e-24  ;;  %1782 = vrsqrt.f32 %v890_v38  ;;  %v1134_v55 = vpop.xlane.xlu0 %1133 }
 0x1b5   : > { %v1142_v58 = vmax.f32 %v1134_v55, 1e-24 }
 0x1b6   : > { %1784 = vrsqrt.f32 %v1141_v52 }
 0x1b7   : > { %1786 = vrsqrt.f32 %v891_v48  ;;  %v1137_v0 = vpop.xlane.xlu1 %1136  ;;  %v1181_v48 = vcombine.high %v1173_v14, %v1173_v14 }
 0x1b8   : > { %1788 = vrsqrt.f32 %v1142_v58  ;;  %v1143_v1 = vmax.f32 %v1137_v0, 1e-24  ;;  %v1140_v2 = vpop.xlane.xlu0 %1139 }
 0x1b9   : > { %1790 = vrsqrt.f32 %v876_v57  ;;  %v1144_v6 = vmax.f32 %v1140_v2, 1e-24  ;;  %v1182_v57 = vcombine.high %v1180_v19, %v1180_v19  ;;  %v1194_v7 = vrot.slane %v1181_v48, %v2695_v13 }
 0x1ba   : > { %1792 = vrsqrt.f32 %v877_v60 }
 0x1bb   : > { %v793_v8 = vpop.xlane.xlu1 %792  ;;  %1794 = vrsqrt.f32 %v1143_v1 }
 0x1bc   : > { %v794_v9 = vmax.f32 %v793_v8, 1e-24  ;;  %1796 = vrsqrt.f32 %v1144_v6  ;;  %v859_v10 = vpop.xlane.xlu0 %858 }
 0x1bd   : > { %v860_v11 = vmax.f32 %v859_v10, 1e-24 }
 0x1be   : > { %1798 = vrsqrt.f32 %v794_v9 }
 0x1bf   : > { %v1779_v12 = vpop.eup %1778  ;;  %1800 = vrsqrt.f32 %v860_v11 }
 0x1c0   : > { %v1781_v15 = vpop.eup %1780  ;;  %v830_v16 = vrot.slane %v1779_v12, 1  ;;  %v833_v28 = vmul.f32 %v1779_v12, %v2618_v39 }
 0x1c1   : > { %v1783_v18 = vpop.eup %1782  ;;  %v767_v20 = vmul.f32 %v1781_v15, %v2626_v51  ;;  %v764_v21 = vrot.slane %v1781_v15, 1 }
 0x1c2   : > { %v894_v31 = vmul.f32 %v1783_v18, %v2597_v41  ;;  %v834_v32 = vmul.f32 %v830_v16, %v2620_v46  ;;  %v1015_v47 = vrot.slane %v833_v28, %v2695_v13 }
 0x1c3   : > { %v1785_v22 = vpop.eup %1784  ;;  %v910_v26 = vrot.slane %v767_v20, %v2695_v13  ;;  %v768_v27 = vmul.f32 %v764_v21, %v2630_v53 }
 0x1c4   : > { %v1787_v24 = vpop.eup %1786  ;;  %v1149_v25 = vmul.f32 %v1785_v22, %v2624_v49  ;;  %v1019_v46 = vrot.slane %v834_v32, %v2695_v13 }
 0x1c5   : > { %v1789_v29 = vpop.eup %1788  ;;  %v914_v38 = vrot.slane %v768_v27, %v2695_v13  ;;  %v895_v49 = vmul.f32 %v1787_v24, %v2595_v40  ;;  %v915_v39 = vmul.f32 %v910_v26, %v894_v31  ;;  %v1117_v26 = vpop.xlane.xlu1 %1116 }
 0x1c6   : > { %v1203_v36 = vmul.f32 %v1186_v23, %v1149_v25  ;;  %v1150_v51 = vmul.f32 %v1789_v29, %v2632_v54  ;;  %v1791_v42 = vpop.eup %1790  ;;  %v2734_v29 = vand.u32 127, %v907_v30 }
 0x1c7   : > { %v1793_v44 = vpop.eup %1792  ;;  %v916_v52 = vmul.f32 %v914_v38, %v895_v49  ;;  %v880_v55 = vmul.f32 %v1791_v42, %v2585_v35  ;;  %v917_v58 = vsel %vm732_vm1, %v915_v39, 0.0 }
 0x1c8   : > { %v1207_v53 = vsel %vm732_vm1, %v1203_v36, 0.0  ;;  %v1204_v45 = vmul.f32 %v1190_v37, %v1150_v51  ;;  %v1795_v41 = vpop.eup %1794  ;;  %v881_v40 = vmul.f32 %v1793_v44, %v2583_v34  ;;  %v1198_v34 = vrot.slane %v1182_v57, %v2695_v13 }
 0x1c9   : > { %1208 = vadd.xlane.f32.xlu0 %v1207_v53  ;;  %v1797_v54 = vpop.eup %1796  ;;  %v1020_v60 = vmul.f32 %v1015_v47, %v880_v55  ;;  %v1151_v0 = vmul.f32 %v1795_v41, %v2641_v61  ;;  %v920_v8 = vsel %vm732_vm1, %v916_v52, 0.0  ;;  %v2738_v36 = vsub.s32 %v2734_v29, %v2687_v43 }
 0x1ca   : > { %v1210_v50 = vsel %vm732_vm1, %v1204_v45, 0.0  ;;  %v1021_v6 = vmul.f32 %v1019_v46, %v881_v40  ;;  %v1152_v35 = vmul.f32 %v1797_v54, %v2651_v3  ;;  %vm1379_vm11 = vcmp.eq.s32.totalorder %v2734_v29, 0 }
 0x1cb   : > { %v1799_v56 = vpop.eup %1798  ;;  %1211 = vadd.xlane.f32.xlu1 %v1210_v50  ;;  %v1022_v61 = vsel %vm732_vm1, %v1020_v60, 0.0  ;;  %v1205_v33 = vmul.f32 %v1194_v7, %v1151_v0  ;;  %vm1382_vm12 = vcmp.eq.s32.totalorder %v2734_v29, 1  ;;  %vm1385_vm13 = vcmp.eq.s32.totalorder %v2734_v29, 2 }
 0x1cc   : > { %v797_v1 = vrot.slane %v1799_v56, 1  ;;  %v1801_v2 = vpop.eup %1800  ;;  %v800_v11 = vmul.f32 %v1799_v56, %v2643_v62  ;;  %v1025_v16 = vsel %vm732_vm1, %v1021_v6, 0.0  ;;  %v1206_v3 = vmul.f32 %v1198_v34, %v1152_v35 }
 0x1cd   : > { %918 = vadd.xlane.f32.xlu0 %v917_v58  ;;  %v863_v10 = vrot.slane %v1801_v2, 1  ;;  %v866_v15 = vmul.f32 %v1801_v2, %v2653_v4  ;;  %v1213_v21 = vsel %vm732_vm1, %v1205_v33, 0.0  ;;  %vm1388_vm14 = vcmp.eq.s32.totalorder %v2734_v29, 3 }
 0x1ce   : > { %v801_v9 = vmul.f32 %v797_v1, %v2645_v63  ;;  %v896_v19 = vmul.f32 %v800_v11, %v767_v20  ;;  %v1216_v24 = vsel %vm732_vm1, %v1206_v3, 0.0  ;;  %v1118_v20 = vmax.f32 %v1117_v26, 1e-24 }
 0x1cf   : > { %921 = vadd.xlane.f32.xlu1 %v920_v8  ;;  %v867_v14 = vmul.f32 %v863_v10, %v2655_v5  ;;  %v1001_v23 = vmul.f32 %v866_v15, %v833_v28  ;;  %vm1391_vm15 = vcmp.eq.s32.totalorder %v2734_v29, 4  ;;  %vm1397_vm1 = vcmp.eq.s32.totalorder %v2734_v29, 6 }
 0x1d0   : > { %v897_v12 = vmul.f32 %v801_v9, %v768_v27  ;;  %1802 = vrsqrt.f32 %v1118_v20  ;;  %v2229_v9 = vmov 0  }
 0x1d1   : > { %1023 = vadd.xlane.f32.xlu0 %v1022_v61  ;;  %v1002_v63 = vmul.f32 %v867_v14, %v834_v32  ;;  %1775 = vset.pattern.permute.xlu1 %v2229_v9 }
 0x1d2   : > { %v900_v18 = vrot.slane %v897_v12, 7  ;;  %1774 = vset.pattern.permute.xlu0 %v2229_v9 }
 0x1d3   : > { %1026 = vadd.xlane.f32.xlu1 %v1025_v16  ;;  %v1005_v22 = vrot.slane %v1002_v63, 7 }
 0x1d4   : > { %v901_v62 = vsel %vm754_vm2, %v900_v18, %v896_v19  ;;  %v953_v19 = vsub.s32 1, %v2687_v43 }
 0x1d5   : > { %1214 = vadd.xlane.f32.xlu0 %v1213_v21  ;;  %v1006_v5 = vsel %vm754_vm2, %v1005_v22, %v1001_v23  ;;  %v903_v4 = vsel %vm757_vm3, %v901_v62, 0.0  ;;  %v1268_v21 = vsub.s32 2, %v2687_v43 }
 0x1d6   : > { %v1008_v25 = vsel %vm757_vm3, %v1006_v5, 0.0 }
 0x1d7   : > { %1217 = vadd.xlane.f32.xlu1 %v1216_v24 }
 0x1d9   : > { %904 = vadd.xlane.f32.xlu0 %v903_v4 }
 0x1db   : > { %1009 = vadd.xlane.f32.xlu1 %v1008_v25 }
 0x1dd   : > { %v1803_v32 = vpop.eup %1802 }
 0x1de   : > { %v1120_v45 = vmul.f32 %v1803_v32, %v2677_v17 }
 0x1e0   : > { %v1153_v55 = vmul.f32 %v1120_v45, %v2691_v59 }
 0x1e2   : > { %v1154_v2 = vsel %vm1106_vm0, %v1153_v55, 0.0  ;;  %v676_v55 = vld [vmem:[#allocation6] sm:$0x3]  ;;  %vm1394_vm0 = vcmp.eq.s32.totalorder %v2734_v29, 5 }
 0x252   : > { %v1209_v27 = vpop.xlane.xlu0 %1208 }
 0x253   : > { %v1219_v44 = vmul.f32 14.285714, %v1209_v27 }
 0x254   : > { %v1212_v31 = vpop.xlane.xlu1 %1211 }
 0x255   : > { %v1220_v49 = vmul.f32 14.285714, %v1212_v31  ;;  %v1230_v50 = vrot.slane %v1219_v44, %v2738_v36 }
 0x256   : > { %v919_v28 = vpop.xlane.xlu0 %918 }
 0x257   : > { %v923_v51 = vmul.f32 14.285714, %v919_v28  ;;  %v1234_v54 = vrot.slane %v1220_v49, %v2738_v36 }
 0x258   : > { %v922_v37 = vpop.xlane.xlu1 %921 }
 0x259   : > { %v2740_v38 = vmul.f32 14.285714, %v922_v37  ;;  %v932_v42 = vrot.slane %v923_v51, %v2738_v36  ;;  %v1243_v6 = vsel %vm754_vm2, %v1234_v54, %v1230_v50 }
 0x25a   : > { %v1024_v53 = vpop.xlane.xlu0 %1023 }
 0x25b   : > { %v936_v30 = vrot.slane %v2740_v38, %v2738_v36  ;;  %v2746_v39 = vmul.f32 14.285714, %v1024_v53 }
 0x25c   : > { %v1027_v47 = vpop.xlane.xlu1 %1026 }
 0x25d   : > { %v2748_v41 = vmul.f32 14.285714, %v1027_v47  ;;  %v1035_v46 = vrot.slane %v2746_v39, %v2738_v36  ;;  %v937_v48 = vsel %vm754_vm2, %v936_v30, %v932_v42 }
 0x25e   : > { %v939_v17 = vsel %vm678_vm4, %v937_v48, -inf  ;;  %v1215_v52 = vpop.xlane.xlu0 %1214 }
 0x25f   : > { %v1039_v56 = vrot.slane %v2748_v41, %v2738_v36  ;;  %940 = vmax.xlane.f32.xlu0 %v939_v17  ;;  %v1221_v40 = vmul.f32 14.285714, %v1215_v52 }
 0x260   : > { %v1218_v57 = vpop.xlane.xlu1 %1217 }
 0x261   : > { %v2759_v58 = vmul.f32 14.285714, %v1218_v57  ;;  %v1238_v60 = vrot.slane %v1221_v40, %v2738_v36  ;;  %v1040_v0 = vsel %vm754_vm2, %v1039_v56, %v1035_v46  ;;  %v679_v56 = vsel %vm678_vm4, %v676_v55, 0.0 }
 0x262   : > { %v1042_v1 = vsel %vm678_vm4, %v1040_v0, -inf  ;;  %v905_v10 = vpop.xlane.xlu0 %904 }
 0x263   : > { %v1242_v59 = vrot.slane %v2759_v58, %v2738_v36  ;;  %1043 = vmax.xlane.f32.xlu1 %v1042_v1  ;;  %1155 = vadd.xlane.f32.xlu0 %v1154_v2  ;;  %v1245_v7 = vsel %vm1244_vm5, %v1238_v60, %v1243_v6  ;;  %v2771_v34 = vmul.f32 14.285714, %v905_v10 }
 0x264   : > { %v1010_v11 = vpop.xlane.xlu1 %1009 }
 0x265   : > { %v1247_v8 = vsel %vm1246_vm6, %v1242_v59, %v1245_v7  ;;  %v2789_v25 = vmul.f32 14.285714, %v1010_v11  ;;  %v675_v11 = vld [vmem:[#allocation3] sm:$0x3] }
 0x266   : > { %v1250_v35 = vsel %vm1249_vm7, %v1247_v8, -inf }
 0x267   : > { %1251 = vmax.xlane.f32.xlu1 %v1250_v35 }
 0x2e8   : > { %v941_v61 = vpop.xlane.xlu0 %940 }
 0x2e9   : > { %v2774_v33 = vmax.f32 %v2771_v34, %v941_v61 }
 0x2eb   : > { %v950_v12 = vrot.slane %v2774_v33, %v2695_v13  ;;  %v954_v20 = vrot.slane %v2774_v33, %v953_v19 }
 0x2ec   : > { %v1044_v14 = vpop.xlane.xlu1 %1043  ;;  %v1156_v15 = vpop.xlane.xlu0 %1155 }
 0x2ed   : > { %v957_v16 = vsub.f32 %v923_v51, %v950_v12  ;;  %v2778_v18 = vmul.f32 14.285714, %v1156_v15  ;;  %v2793_v27 = vmax.f32 %v2789_v25, %v1044_v14  ;;  %v958_v32 = vsub.f32 %v2740_v38, %v954_v20  ;;  %v677_v20 = vld [vmem:[#allocation8] sm:$0x3] }
 0x2ee   : > { %v688_v12 = vsub.f32 1.0, %v675_v11 }
 0x2ef   : > { %v959_v3 = vmul.f32 1.442695, %v957_v16  ;;  %v1053_v51 = vrot.slane %v2793_v27, %v2695_v13  ;;  %v1057_v53 = vrot.slane %v2793_v27, %v953_v19 }
 0x2f0   : > { %v1252_v63 = vpop.xlane.xlu1 %1251 }
 0x2f1   : > { %1804 = vpow2.f32 %v959_v3  ;;  %v2783_v22 = vmax.f32 %v2778_v18, %v1252_v63  ;;  %v1060_v45 = vsub.f32 %v2746_v39, %v1053_v51  ;;  %v1061_v30 = vsub.f32 %v2748_v41, %v1057_v53 }
 0x2f3   : > { %v1261_v62 = vrot.slane %v2783_v22, %v2695_v13  ;;  %v1265_v23 = vrot.slane %v2783_v22, %v953_v19  ;;  %v1269_v24 = vrot.slane %v2783_v22, %v1268_v21  ;;  %v1062_v47 = vmul.f32 1.442695, %v1060_v45 }
 0x2f4   : > { %v1064_v13 = vmul.f32 1.442695, %v1061_v30 }
 0x2f5   : > { %v1278_v5 = vsub.f32 %v1219_v44, %v1261_v62  ;;  %v1279_v4 = vsub.f32 %v1220_v49, %v1265_v23  ;;  %v1280_v31 = vsub.f32 %v1221_v40, %v1269_v24  ;;  %v1272_v49 = vsub.s32 3, %v2687_v43 }
 0x2f6   : > { %v961_v44 = vmul.f32 1.442695, %v958_v32  ;;  %v709_v32 = vsub.f32 1.0, %v677_v20 }
 0x2f7   : > { %v1282_v26 = vmul.f32 1.442695, %v1278_v5  ;;  %v1284_v28 = vmul.f32 1.442695, %v1279_v4  ;;  %v1286_v37 = vmul.f32 1.442695, %v1280_v31  ;;  %v1273_v38 = vrot.slane %v2783_v22, %v1272_v49 }
 0x2f9   : > { %1806 = vpow2.f32 %v1282_v26  ;;  %v1281_v48 = vsub.f32 %v2759_v58, %v1273_v38 }
 0x2fa   : > { %1808 = vpow2.f32 %v1284_v28 }
 0x2fb   : > { %1810 = vpow2.f32 %v1286_v37  ;;  %v1288_v43 = vmul.f32 1.442695, %v1281_v48 }
 0x2fc   : > { %1812 = vpow2.f32 %v961_v44 }
 0x2fd   : > { %1814 = vpow2.f32 %v1062_v47 }
 0x2fe   : > { %v1805_v42 = vpop.eup %1804  ;;  %1816 = vpow2.f32 %v1064_v13 }
 0x2ff   : > { %966 = vperm.xlu0 %1774, %v1805_v42   ;;  %1818 = vpow2.f32 %v1288_v43  ;;  %v943_v43 = vsub.f32 %v2771_v34, %v2774_v33 }
 0x300   : > { %1820 = vlog2.f32 %v675_v11 }
 0x301   : > { %1822 = vlog2.f32 %v688_v12 }
 0x306   : > { %v1807_v46 = vpop.eup %1806 }
 0x307   : > { %1295 = vperm.xlu1 %1775, %v1807_v46   ;;  %v1809_v54 = vpop.eup %1808 }
 0x308   : > { %v1811_v50 = vpop.eup %1810 }
 0x309   : > { %v1813_v39 = vpop.eup %1812 }
 0x30a   : > { %v1815_v17 = vpop.eup %1814 }
 0x30b   : > { %1298 = vperm.xlu1 %1775, %v1809_v54   ;;  %v1817_v41 = vpop.eup %1816 }
 0x30c   : > { %v1819_v52 = vpop.eup %1818 }
 0x30d   : > { %v1821_v24 = vpop.eup %1820 }
 0x30e   : > { %v1823_v5 = vpop.eup %1822  ;;  %v686_v4 = vmul.f32 0.6931472, %v1821_v24 }
 0x30f   : > { %1301 = vperm.xlu1 %1775, %v1811_v50   ;;  %v690_v26 = vmul.f32 0.6931472, %v1823_v5  ;;  %v944_v50 = vmul.f32 1.442695, %v943_v43 }
 0x310   : > { %v687_v31 = vmax.f32 %v686_v4, -100.0 }
 0x311   : > { %v691_v28 = vmax.f32 %v690_v26, -100.0 }
 0x312   : > { %v708_v51 = vmul.f32 %v687_v31, %v677_v20 }
 0x313   : > { %969 = vperm.xlu1 %1775, %v1813_v39   ;;  %v710_v37 = vmul.f32 %v709_v32, %v691_v28  ;;  %v1046_v39 = vsub.f32 %v2789_v25, %v2793_v27 }
 0x317   : > { %1069 = vperm.xlu1 %1775, %v1815_v17   ;;  %v1047_v17 = vmul.f32 1.442695, %v1046_v39 }
 0x31b   : > { %1072 = vperm.xlu1 %1775, %v1817_v41   ;;  %v1254_v41 = vsub.f32 %v2778_v18, %v2783_v22 }
 0x31f   : > { %1304 = vperm.xlu1 %1775, %v1819_v52   ;;  %v1255_v52 = vmul.f32 1.442695, %v1254_v41 }
 0x343   : > { %680 = vadd.xlane.f32.xlu1 %v679_v56 }
 0x37a   : > { %v967_v60 = vpop.permute.xlu0 %966 }
 0x37b   : > { %v974_v1 = vrot.slane %v967_v60, %v2738_v36 }
 0x382   : > { %v1296_v40 = vpop.permute.xlu1 %1295 }
 0x383   : > { %v1309_v14 = vrot.slane %v1296_v40, %v2738_v36 }
 0x386   : > { %v1299_v57 = vpop.permute.xlu1 %1298 }
 0x387   : > { %v1313_v35 = vrot.slane %v1299_v57, %v2738_v36 }
 0x389   : > { %v1322_v63 = vsel %vm754_vm2, %v1313_v35, %v1309_v14 }
 0x38a   : > { %v1302_v58 = vpop.permute.xlu1 %1301 }
 0x38b   : > { %v1317_v61 = vrot.slane %v1302_v58, %v2738_v36 }
 0x38d   : > { %v1323_v21 = vsel %vm1244_vm5, %v1317_v61, %v1322_v63  ;;  %v1359_v63 = vld [vmem:[#allocation2 + $0x1] sm:$0x1] }
 0x38e   : > { %v970_v0 = vpop.permute.xlu1 %969 }
 0x38f   : > { %v978_v2 = vrot.slane %v970_v0, %v2738_v36 }
 0x391   : > { %v979_v6 = vsel %vm754_vm2, %v978_v2, %v974_v1 }
 0x392   : > { %v1070_v59 = vpop.permute.xlu1 %1069  ;;  %v981_v7 = vsel %vm678_vm4, %v979_v6, 0.0 }
 0x393   : > { %982 = vadd.xlane.f32.xlu0 %v981_v7  ;;  %v1077_v9 = vrot.slane %v1070_v59, %v2738_v36 }
 0x396   : > { %v1073_v8 = vpop.permute.xlu1 %1072 }
 0x397   : > { %v1081_v10 = vrot.slane %v1073_v8, %v2738_v36 }
 0x399   : > { %v1082_v15 = vsel %vm754_vm2, %v1081_v10, %v1077_v9  ;;  %vm1400_vm2 = vcmp.eq.s32.totalorder %v2734_v29, 7 }
 0x39a   : > { %v1305_v16 = vpop.permute.xlu1 %1304  ;;  %v1084_v3 = vsel %vm678_vm4, %v1082_v15, 0.0  ;;  %v1346_v15 = vld [vmem:[#allocation2] sm:$0x1] }
 0x39b   : > { %v1321_v19 = vrot.slane %v1305_v16, %v2738_v36  ;;  %1085 = vadd.xlane.f32.xlu0 %v1084_v3  ;;  %v711_v36 = vadd.f32 %v710_v37, %v708_v51 }
 0x39d   : > { %v1324_v62 = vsel %vm1246_vm6, %v1321_v19, %v1323_v21  ;;  %v712_v42 = vsub.f32 0.0, %v711_v36  ;;  %v1360_v21 = vsel %vm1347_vm9, %v1359_v63, 0.0 }
 0x39e   : > { %v1326_v23 = vsel %vm1249_vm7, %v1324_v62, 0.0 }
 0x39f   : > { %1327 = vadd.xlane.f32.xlu1 %v1326_v23  ;;  %v713_v49 = vsel %vm678_vm4, %v712_v42, 0.0 }
 0x3a3   : > { %714 = vadd.xlane.f32.xlu1 %v713_v49 }
 0x3cc   : > { %v681_v44 = vpop.xlane.xlu1 %680 }
 0x3cd   : > { %v682_v53 = vmax.f32 %v681_v44, 1e-12 }
 0x3cf   : > { %1824 = vrcp.f32 %v682_v53 }
 0x3d0   : > { %1826 = vpow2.f32 %v944_v50 }
 0x3d1   : > { %1828 = vpow2.f32 %v1047_v17 }
 0x3d2   : > { %1830 = vpow2.f32 %v1255_v52 }
 0x3dc   : > { %v1825_v45 = vpop.eup %1824 }
 0x3dd   : > { %v684_v30 = vmul.f32 %v1825_v45, %v676_v55  ;;  %v1827_v55 = vpop.eup %1826 }
 0x3de   : > { %v1829_v57 = vpop.eup %1828 }
 0x3df   : > { %v692_v47 = vmul.f32 %v687_v31, %v684_v30  ;;  %v693_v38 = vsub.f32 1.0, %v684_v30  ;;  %v1831_v0 = vpop.eup %1830 }
 0x3e1   : > { %v694_v46 = vmul.f32 %v693_v38, %v691_v28 }
 0x3e3   : > { %v695_v13 = vadd.f32 %v694_v46, %v692_v47 }
 0x3e5   : > { %v696_v48 = vsub.f32 0.0, %v695_v13 }
 0x3e7   : > { %v697_v54 = vsel %vm678_vm4, %v696_v48, 0.0 }
 0x3e8   : > { %698 = vadd.xlane.f32.xlu0 %v697_v54 }
 0x41c   : > { %v983_v56 = vpop.xlane.xlu0 %982 }
 0x41d   : > { %v984_v40 = vadd.f32 %v1827_v55, %v983_v56 }
 0x41f   : > { %1832 = vlog2.f32 %v984_v40 }
 0x424   : > { %v1086_v58 = vpop.xlane.xlu0 %1085 }
 0x425   : > { %v1087_v60 = vadd.f32 %v1829_v57, %v1086_v58 }
 0x427   : > { %1834 = vlog2.f32 %v1087_v60 }
 0x428   : > { %v1328_v1 = vpop.xlane.xlu1 %1327 }
 0x429   : > { %v1329_v2 = vadd.f32 %v1831_v0, %v1328_v1 }
 0x42b   : > { %1836 = vlog2.f32 %v1329_v2 }
 0x42c   : > { %v1833_v6 = vpop.eup %1832 }
 0x42d   : > { %v986_v59 = vmul.f32 0.6931472, %v1833_v6 }
 0x42f   : > { %v987_v7 = vadd.f32 %v986_v59, %v2774_v33  ;;  %v1348_v33 = vsel %vm1347_vm9, %v1346_v15, 0.0 }
 0x431   : > { %v988_v8 = vsub.f32 %v987_v7, %v2771_v34 }
 0x433   : > { %v990_v35 = vsel %vm989_vm8, %v988_v8, 0.0 }
 0x434   : > { %v1835_v9 = vpop.eup %1834  ;;  %991 = vadd.xlane.f32.xlu0 %v990_v35 }
 0x435   : > { %v1089_v10 = vmul.f32 0.6931472, %v1835_v9 }
 0x437   : > { %v1090_v11 = vadd.f32 %v1089_v10, %v2793_v27  ;;  %v715_v27 = vpop.xlane.xlu1 %714 }
 0x438   : > { %v1837_v61 = vpop.eup %1836  ;;  %v716_v62 = vrot.slane %v715_v27, 4 }
 0x439   : > { %v1331_v12 = vmul.f32 0.6931472, %v1837_v61  ;;  %v1091_v14 = vsub.f32 %v1090_v11, %v2789_v25 }
 0x43a   : > { %v717_v23 = vadd.f32 %v716_v62, %v715_v27 }
 0x43b   : > { %v1092_v16 = vsel %vm989_vm8, %v1091_v14, 0.0  ;;  %v1332_v3 = vadd.f32 %v1331_v12, %v2783_v22 }
 0x43c   : > { %1093 = vadd.xlane.f32.xlu1 %v1092_v16  ;;  %v718_v25 = vrot.slane %v717_v23, 2 }
 0x43d   : > { %v1333_v34 = vsub.f32 %v1332_v3, %v2778_v18 }
 0x43e   : > { %v719_v4 = vadd.f32 %v718_v25, %v717_v23 }
 0x43f   : > { %v1335_v19 = vsel %vm1334_vm10, %v1333_v34, 0.0 }
 0x440   : > { %1349 = vadd.xlane.f32.xlu1 %v1348_v33  ;;  %1336 = vadd.xlane.f32.xlu0 %v1335_v19  ;;  %v720_v20 = vrot.slane %v719_v4, 1 }
 0x442   : > { %v721_v32 = vadd.f32 %v720_v20, %v719_v4 }
 0x444   : > { %1361 = vadd.xlane.f32.xlu0 %v1360_v21 }
 0x471   : > { %v699_v24 = vpop.xlane.xlu0 %698 }
 0x472   : > { %v700_v5 = vrot.slane %v699_v24, 4 }
 0x474   : > { %v701_v26 = vadd.f32 %v700_v5, %v699_v24 }
 0x476   : > { %v702_v22 = vrot.slane %v701_v26, 2 }
 0x478   : > { %v703_v31 = vadd.f32 %v702_v22, %v701_v26 }
 0x47a   : > { %v704_v28 = vrot.slane %v703_v31, 1 }
 0x47c   : > { %v705_v18 = vadd.f32 %v704_v28, %v703_v31 }
 0x47e   : > { %1618 = vpush %v705_v18 }
 0x47f   : > { %1620 = vpush %v721_v32 }
 0x4af   : > { %s1619_s18 = spop %1618 }
 0x4b0   : > { %s2835_s29 = spop %1620  ;;  %s707_s27 = smul.f32 0.0625, %s1619_s18 }
 0x4b1   : > { %s723_s24 = smul.f32 0.0625, %s2835_s29 }
 0x4b2   : > { %v1383_v10 = vstv %s707_s27 }
 0x4b3   : > { %s1376_s0 = smul.f32 0.5, %s723_s24  ;;  %v1392_v16 = vstv %s723_s24 }
 0x4bd   : > { %v992_v51 = vpop.xlane.xlu0 %991 }
 0x4be   : > { %v993_v37 = vrot.slane %v992_v51, 4 }
 0x4c0   : > { %v994_v36 = vadd.f32 %v993_v37, %v992_v51 }
 0x4c2   : > { %v995_v42 = vrot.slane %v994_v36, 2 }
 0x4c4   : > { %v996_v49 = vadd.f32 %v995_v42, %v994_v36 }
 0x4c5   : > { %v1094_v44 = vpop.xlane.xlu1 %1093 }
 0x4c6   : > { %v1095_v53 = vrot.slane %v1094_v44, 4  ;;  %v997_v45 = vrot.slane %v996_v49, 1 }
 0x4c8   : > { %v1096_v30 = vadd.f32 %v1095_v53, %v1094_v44  ;;  %v998_v47 = vadd.f32 %v997_v45, %v996_v49 }
 0x4c9   : > { %v1350_v38 = vpop.xlane.xlu1 %1349  ;;  %v1337_v46 = vpop.xlane.xlu0 %1336 }
 0x4ca   : > { %v1097_v13 = vrot.slane %v1096_v30, 2  ;;  %v1351_v48 = vrot.slane %v1350_v38, 4  ;;  %v1338_v54 = vrot.slane %v1337_v46, 4  ;;  %1622 = vpush %v998_v47 }
 0x4cc   : > { %v1352_v43 = vadd.f32 %v1351_v48, %v1350_v38  ;;  %v1339_v50 = vadd.f32 %v1338_v54, %v1337_v46  ;;  %v1098_v39 = vadd.f32 %v1097_v13, %v1096_v30 }
 0x4cd   : > { %v1362_v17 = vpop.xlane.xlu0 %1361 }
 0x4ce   : > { %v1353_v41 = vrot.slane %v1352_v43, 2  ;;  %v1340_v52 = vrot.slane %v1339_v50, 2  ;;  %v1363_v55 = vrot.slane %v1362_v17, 4  ;;  %v1099_v56 = vrot.slane %v1098_v39, 1 }
 0x4d0   : > { %v1354_v40 = vadd.f32 %v1353_v41, %v1352_v43  ;;  %v1364_v57 = vadd.f32 %v1363_v55, %v1362_v17  ;;  %v1100_v58 = vadd.f32 %v1099_v56, %v1098_v39  ;;  %v1341_v60 = vadd.f32 %v1340_v52, %v1339_v50 }
 0x4d2   : > { %v1365_v0 = vrot.slane %v1364_v57, 2  ;;  %1624 = vpush %v1100_v58  ;;  %v1342_v1 = vrot.slane %v1341_v60, 1  ;;  %v1355_v2 = vrot.slane %v1354_v40, 1 }
 0x4d4   : > { %v1366_v6 = vadd.f32 %v1365_v0, %v1364_v57  ;;  %v1343_v59 = vadd.f32 %v1342_v1, %v1341_v60  ;;  %v1356_v7 = vadd.f32 %v1355_v2, %v1354_v40 }
 0x4d6   : > { %1626 = vpush %v1343_v59  ;;  %v1367_v8 = vrot.slane %v1366_v6, 1 }
 0x4d7   : > { %1628 = vpush %v1356_v7 }
 0x4d8   : > { %v1368_v35 = vadd.f32 %v1367_v8, %v1366_v6 }
 0x4da   : > { %1630 = vpush %v1368_v35 }
 0x4fb   : > { %s1623_s17 = spop %1622 }
 0x4fc   : > { %s1000_s23 = smul.f32 0.5, %s1623_s17 }
 0x503   : > { %s1625_s22 = spop %1624 }
 0x504   : > { %s1102_s20 = smul.f32 0.5, %s1625_s22 }
 0x506   : > { %s1103_s15 = sadd.f32 %s1102_s20, %s1000_s23 }
 0x507   : > { %s1627_s19 = spop %1626 }
 0x508   : > { %s1372_s7 = smul.f32 0.01, %s1103_s15  ;;  %s1629_s8 = spop %1628  ;;  %v1386_v61 = vstv %s1103_s15 }
 0x509   : > { %s1345_s30 = smul.f32 0.25, %s1627_s19 }
 0x50a   : > { %s1373_s28 = sadd.f32 %s1372_s7, %s707_s27  ;;  %s1358_s21 = smul.f32 0.00012207031, %s1629_s8 }
 0x50b   : > { %s1374_s16 = smul.f32 0.1, %s1345_s30  ;;  %s1631_s1 = spop %1630  ;;  %v1389_v14 = vstv %s1345_s30 }
 0x50c   : > { %s1370_s13 = smul.f32 0.00012207031, %s1631_s1  ;;  %v1395_v33 = vstv %s1358_s21 }
 0x50d   : > { %s1375_s25 = sadd.f32 %s1374_s16, %s1373_s28 }
 0x50e   : > { %s1371_s2 = sadd.f32 %s1370_s13, %s1358_s21  ;;  %v1398_v19 = vstv %s1370_s13 }
 0x50f   : > { %s1377_s3 = sadd.f32 %s1376_s0, %s1375_s25 }
 0x510   : > { %v1401_v27 = vstv %s1371_s2 }
 0x511   : > { %s1378_s4 = sadd.f32 %s1377_s3, %s1371_s2 }
 0x513   : > { %v1380_v9 = vstv %s1378_s4 }
 0x514   : > { %v1381_v11 = vsel %vm1379_vm11, %v1380_v9, 0.0 }
 0x515   : > { %v1384_v12 = vsel %vm1382_vm12, %v1383_v10, %v1381_v11 }
 0x516   : > { %v1387_v15 = vsel %vm1385_vm13, %v1386_v61, %v1384_v12 }
 0x517   : > { %v1390_v3 = vsel %vm1388_vm14, %v1389_v14, %v1387_v15 }
 0x518   : > { %v1393_v34 = vsel %vm1391_vm15, %v1392_v16, %v1390_v3 }
 0x519   : > { %v1396_v63 = vsel %vm1394_vm0, %v1395_v33, %v1393_v34 }
 0x51a   : > { %v1399_v21 = vsel %vm1397_vm1, %v1398_v19, %v1396_v63 }
 0x51b   : > { %v1402_v62 = vsel %vm1400_vm2, %v1401_v27, %v1399_v21 }
 0x51c   : > { %1403 = vst [vmem:[#allocation20] sm:$0x1] %v1402_v62 }
 0x51d PF: > { %p1726_p2 = scmp.eq.s32.totalorder %s2322_s14, 3  ;;  %s2230_s3 = smov [#allocation20]  }
 0x51e   : > { %s1411_s4 = sshll.u32 %s2230_s3, 4  ;;  %s1412_s4 = int_to_ptr.vmem [resolvable:$true] %s1411_s4 }
 0x51f   : > { %s2130_s18 = scalar_lea.vmem %s1412_s4, 16  ;;  %s2136_s29 = scalar_lea.vmem %s1412_s4, 32 }
 0x520   : > { %p2131_p9 = scmp.ne.s32.totalorder %s1412_s4, %s2130_s18  ;;  %p2137_p0 = scmp.lt.s32.totalorder %s1412_s4, %s1412_s4 }
 0x521   : > { %p2138_p1 = scmp.lt.s32.totalorder %s2136_s29, %s2130_s18 }
 0x522   : > { %p2132_p5 = pnand %p2131_p9, %p1726_p2 }
 0x523   : > { %p2139_p4 = por %p2138_p1, %p2137_p0 }
 0x524   : > { %p2133_p12 = pneg %p2132_p5 }
 0x526   : > { %p2140_p6 = pnand %p2139_p4, %p2133_p12 }
 0x528   : > { %2143 = shalt.err (!%p2140_p6)
}
 0x529   : > { %s2953_s23 = sld [smem:[#allocation39_spill]] }
 0x52f   : > { %1671 = dma.vmem_to_hbm [thread:$0]  (%p1726_p2), %s1412_s4, 16, %s2953_s23, [#allocation5]  }
 0x530   : > { %2195 = dma.done.wait (%p1726_p2), [#allocation5], 16  }
 0x531   : > { %2197 = vsyncadd (%p1726_p2), [#allocation5], 4294967280 }
 0x532 PF: > { %s2954_s28 = sld [smem:[#allocation29_spill]]  ;;  %s2957_s25 = smov %s2204_s26 }
 0x533   : > { %s2955_s22 = sld [smem:[#allocation28_spill]] }
 0x534   : > { %s2956_s27 = sld [smem:[#allocation30_spill]] }
 0x538   : > { %p26_p7 = scmp.ge.s32.totalorder %s2954_s28, 6  }
 0x539   : > { %s2958_s26 = smov %s2955_s22 }
 0x53a   :  { %28 = sbr.rel (!%p26_p7) target bundleno = 16 (0x10), region = 170 }
 0x53f   :  { %1424 = vsyncpa [#allocation4], 1 }
 0x540   :  { %1426 = vsyncpa [#allocation4 + $0x1], 1 }
 0x541   :  { %1427 = vsyncpa [#allocation7], 1 }
 0x542   :  { %1428 = vsyncpa [#allocation10], 1 }
 0x543   :  { %1429 = vsyncpa [#allocation13], 1 }
 0x544   :  { %1430 = vsyncpa [#allocation16], 1 }
 0x545   :  { %1431 = vsyncpa [#allocation5], 1 }
 0x546   :  { %1433 = vsyncpa [#allocation5 + $0x1], 1 }

</bundles_post_ra>
